<compile_context>
chip_gen: v6e
topology: v6e:2x2x1
jax: 0.10.0
libtpu: 0.0.40
codegen_flags: <defaults>
</compile_context>

<pallas_src>
import functools

import jax
import jax.numpy as jnp
from jax.experimental import pallas as pl
from jax.experimental.pallas import tpu as pltpu

# ---------------- small synthetic Virchow2-style config ---------------------
# (real Virchow2: img 224, patch 14, dim 1280, 32 blocks, 16 heads, 4 reg tokens)
IMG = 16
PATCH = 8
CHANS = 3
DIM = 128
HEADS = 4
HEAD_DIM = DIM // HEADS
DEPTH = 2
MLP_HIDDEN = 256          # lane-aligned (feedback); SwiGLUPacked: fc1 emits 2*MLP_HIDDEN
REG_TOKENS = 4            # -> patch tokens start at index 5, exactly like Virchow2
N_PATCH = (IMG // PATCH) ** 2
N_TOK = 1 + REG_TOKENS + N_PATCH          # 9 real tokens
N_PAD = 16                                # padded to sublane multiple of 8
LN_EPS = 1e-6
CPP = CHANS * PATCH * PATCH


# ----------------------------- kernel helpers --------------------------------
def _layernorm(x, g, b):
    mu = jnp.mean(x, axis=-1, keepdims=True)
    xc = x - mu
    var = jnp.mean(xc * xc, axis=-1, keepdims=True)
    return xc * jax.lax.rsqrt(var + LN_EPS) * g + b


# ----------------------------- embed kernel -----------------------------------
def _embed_kernel(patches_ref, pw_ref, pb_ref, static_ref, pos_patch_ref, o_ref):
    # patch-embed conv (kernel == stride) as a bf16 MXU matmul + bias,
    # with cls/reg tokens and positional embedding folded into the epilogue.
    patches = patches_ref[0].astype(jnp.bfloat16)                      # [N_PATCH, CPP]
    tok = jnp.dot(patches, pw_ref[...],
                  preferred_element_type=jnp.float32) + pb_ref[...]    # [N_PATCH, DIM]
    full = jnp.concatenate(
        [static_ref[...],                                              # cls+pos, reg+pos
         tok + pos_patch_ref[...],                                     # patch tokens + pos
         jnp.zeros((N_PAD - N_TOK, DIM), jnp.float32)],                # pad rows
        axis=0)                                                        # [N_PAD, DIM]
    o_ref[0] = full


def embed(patches, patch_w, patch_b, static_prefix, pos_patch):
    B = patches.shape[0]
    return pl.pallas_call(
        _embed_kernel,
        grid=(B,),
        in_specs=[
            pl.BlockSpec((1, N_PATCH, CPP), lambda b: (b, 0, 0)),
            pl.BlockSpec((CPP, DIM), lambda b: (0, 0)),
            pl.BlockSpec((1, DIM), lambda b: (0, 0)),
            pl.BlockSpec((1 + REG_TOKENS, DIM), lambda b: (0, 0)),
            pl.BlockSpec((N_PATCH, DIM), lambda b: (0, 0)),
        ],
        out_specs=pl.BlockSpec((1, N_PAD, DIM), lambda b: (b, 0, 0)),
        out_shape=jax.ShapeDtypeStruct((B, N_PAD, DIM), jnp.float32),
        compiler_params=pltpu.CompilerParams(dimension_semantics=("parallel",)),
    )(patches, patch_w, patch_b, static_prefix, pos_patch)


# ----------------------- fused transformer block kernel -----------------------
def _block_kernel(x_ref, ln1_g, ln1_b, qkv_w, qkv_b, proj_w, proj_b,
                  ln2_g, ln2_b, fc1_w, fc1_b, fc2_w, fc2_b, o_ref, *, scale):
    x = x_ref[0]                                                       # [N_PAD, DIM] f32

    # --- attention branch (pre-norm) ---
    hn = _layernorm(x, ln1_g[...], ln1_b[...])
    qkv = jnp.dot(hn.astype(jnp.bfloat16), qkv_w[...],
                  preferred_element_type=jnp.float32) + qkv_b[...]     # [N_PAD, 3*DIM]

    # pad keys (rows >= N_TOK) masked out of the softmax
    kmask = jax.lax.broadcasted_iota(jnp.int32, (N_PAD, N_PAD), 1) < N_TOK
    heads = []
    for hd in range(HEADS):                                            # static unroll
        q_h = qkv[:, hd * HEAD_DIM:(hd + 1) * HEAD_DIM]
        k_h = qkv[:, DIM + hd * HEAD_DIM:DIM + (hd + 1) * HEAD_DIM]
        v_h = qkv[:, 2 * DIM + hd * HEAD_DIM:2 * DIM + (hd + 1) * HEAD_DIM]
        s = jnp.dot(q_h, k_h.T, preferred_element_type=jnp.float32) * scale
        s = jnp.where(kmask, s, jnp.float32(-1e30))
        s = s - jnp.max(s, axis=-1, keepdims=True)
        p = jnp.exp(s)
        p = p * pl.reciprocal(jnp.sum(p, axis=-1, keepdims=True), approx=True)
        heads.append(jnp.dot(p, v_h, preferred_element_type=jnp.float32))
    ao = jnp.concatenate(heads, axis=-1)                               # [N_PAD, DIM]

    x1 = x + jnp.dot(ao.astype(jnp.bfloat16), proj_w[...],
                     preferred_element_type=jnp.float32) + proj_b[...]  # residual folded

    # --- SwiGLUPacked MLP branch (pre-norm) ---
    hn2 = _layernorm(x1, ln2_g[...], ln2_b[...])
    h12 = jnp.dot(hn2.astype(jnp.bfloat16), fc1_w[...],
                  preferred_element_type=jnp.float32) + fc1_b[...]     # [N_PAD, 2*H]
    a = h12[:, :MLP_HIDDEN]                                            # 128-aligned split
    g = h12[:, MLP_HIDDEN:]
    gated = a * jax.nn.sigmoid(a) * g                                  # SiLU(a) * g, f32
    o_ref[0] = x1 + jnp.dot(gated.astype(jnp.bfloat16), fc2_w[...],
                            preferred_element_type=jnp.float32) + fc2_b[...]


def _block_cost(B):
    flops_per = (2 * N_PAD * DIM * 3 * DIM
                 + 2 * N_PAD * DIM * DIM
                 + HEADS * (4 * N_PAD * N_PAD * HEAD_DIM)
                 + 2 * N_PAD * DIM * 2 * MLP_HIDDEN
                 + 2 * N_PAD * MLP_HIDDEN * DIM)
    trans_per = HEADS * N_PAD * N_PAD + N_PAD * MLP_HIDDEN + 4 * N_PAD
    bytes_w = 2 * (DIM * 3 * DIM + DIM * DIM + DIM * 2 * MLP_HIDDEN + MLP_HIDDEN * DIM)
    bytes_small = 4 * (3 * DIM + 2 * MLP_HIDDEN + 6 * DIM)
    bytes_x = 2 * B * N_PAD * DIM * 4
    return pl.CostEstimate(flops=B * flops_per,
                           transcendentals=B * trans_per,
                           bytes_accessed=bytes_w + bytes_small + bytes_x)


def transformer_block(x, blk):
    B = x.shape[0]
    vec = lambda b: (0, 0)  # noqa: E731  (weights: same full block every step)
    return pl.pallas_call(
        functools.partial(_block_kernel, scale=HEAD_DIM ** -0.5),
        grid=(B,),
        in_specs=[
            pl.BlockSpec((1, N_PAD, DIM), lambda b: (b, 0, 0)),
            pl.BlockSpec((1, DIM), vec), pl.BlockSpec((1, DIM), vec),
            pl.BlockSpec((DIM, 3 * DIM), vec), pl.BlockSpec((1, 3 * DIM), vec),
            pl.BlockSpec((DIM, DIM), vec), pl.BlockSpec((1, DIM), vec),
            pl.BlockSpec((1, DIM), vec), pl.BlockSpec((1, DIM), vec),
            pl.BlockSpec((DIM, 2 * MLP_HIDDEN), vec), pl.BlockSpec((1, 2 * MLP_HIDDEN), vec),
            pl.BlockSpec((MLP_HIDDEN, DIM), vec), pl.BlockSpec((1, DIM), vec),
        ],
        out_specs=pl.BlockSpec((1, N_PAD, DIM), lambda b: (b, 0, 0)),
        out_shape=jax.ShapeDtypeStruct((B, N_PAD, DIM), jnp.float32),
        compiler_params=pltpu.CompilerParams(dimension_semantics=("parallel",)),
        cost_estimate=_block_cost(B),
    )(x, blk["ln1_g"], blk["ln1_b"], blk["qkv_w"], blk["qkv_b"],
      blk["proj_w"], blk["proj_b"], blk["ln2_g"], blk["ln2_b"],
      blk["fc1_w"], blk["fc1_b"], blk["fc2_w"], blk["fc2_b"])


# ----------------- fused final LN + cls extract + mean pool -------------------
def _final_kernel(x_ref, g_ref, b_ref, cls_ref, pool_ref):
    hn = _layernorm(x_ref[0], g_ref[...], b_ref[...])                  # [N_PAD, DIM]
    cls_ref[0] = hn[0:1, :]
    rows = jax.lax.broadcasted_iota(jnp.int32, (N_PAD, DIM), 0)
    pmask = (rows >= 1 + REG_TOKENS) & (rows < N_TOK)                  # patch-token rows only
    pool_ref[0] = jnp.sum(jnp.where(pmask, hn, 0.0), axis=0,
                          keepdims=True) * (1.0 / N_PATCH)


def final_head(h, g, b):
    B = h.shape[0]
    return pl.pallas_call(
        _final_kernel,
        grid=(B,),
        in_specs=[
            pl.BlockSpec((1, N_PAD, DIM), lambda b: (b, 0, 0)),
            pl.BlockSpec((1, DIM), lambda b: (0, 0)),
            pl.BlockSpec((1, DIM), lambda b: (0, 0)),
        ],
        out_specs=[
            pl.BlockSpec((1, 1, DIM), lambda b: (b, 0, 0)),
            pl.BlockSpec((1, 1, DIM), lambda b: (b, 0, 0)),
        ],
        out_shape=(jax.ShapeDtypeStruct((B, 1, DIM), jnp.float32),
                   jax.ShapeDtypeStruct((B, 1, DIM), jnp.float32)),
        compiler_params=pltpu.CompilerParams(dimension_semantics=("parallel",)),
    )(h, g, b)


# ----------------------------- parameters ------------------------------------
def init_params(key):
    # deterministic synthetic weights; real model loads a HF checkpoint.
    n_rand = 5 + 8 * DEPTH
    kit = iter(jax.random.split(key, n_rand))

    def nrm(shape, dtype=jnp.float32, scale=0.02):
        return (scale * jax.random.normal(next(kit), shape, dtype=jnp.float32)).astype(dtype)

    p = {
        # conv2d(C, DIM, kernel=PATCH, stride=PATCH) reshaped: [C*P*P, DIM], bf16 for MXU
        "patch_w": nrm((CPP, DIM), jnp.bfloat16),
        "patch_b": nrm((1, DIM)),
        "cls": nrm((1, DIM)),
        "reg": nrm((REG_TOKENS, DIM)),
        "pos": nrm((N_TOK, DIM)),
        "ln_f_g": jnp.ones((1, DIM), jnp.float32),
        "ln_f_b": jnp.zeros((1, DIM), jnp.float32),
        "blocks": [],
    }
    for _ in range(DEPTH):
        p["blocks"].append(dict(
            ln1_g=jnp.ones((1, DIM), jnp.float32), ln1_b=jnp.zeros((1, DIM), jnp.float32),
            qkv_w=nrm((DIM, 3 * DIM), jnp.bfloat16), qkv_b=nrm((1, 3 * DIM)),
            proj_w=nrm((DIM, DIM), jnp.bfloat16), proj_b=nrm((1, DIM)),
            ln2_g=jnp.ones((1, DIM), jnp.float32), ln2_b=jnp.zeros((1, DIM), jnp.float32),
            fc1_w=nrm((DIM, 2 * MLP_HIDDEN), jnp.bfloat16), fc1_b=nrm((1, 2 * MLP_HIDDEN)),
            fc2_w=nrm((MLP_HIDDEN, DIM), jnp.bfloat16), fc2_b=nrm((1, DIM)),
        ))
    return p


# ----------------------------- forward pass -----------------------------------
def virchow2_forward(params, x, mode="cls"):
    """x: [B, C, H, W] float32 (NCHW, matching the PyTorch module)."""
    B, C, H, W = x.shape
    gh, gw = H // PATCH, W // PATCH

    # patchify (pure layout glue); matmul + token assembly happen in the embed kernel
    patches = x.reshape(B, C, gh, PATCH, gw, PATCH)
    patches = patches.transpose(0, 2, 4, 1, 3, 5).reshape(B, gh * gw, CPP)

    # parameter-only precompute of the non-patch token rows (cls/reg with pos folded in)
    static_prefix = jnp.concatenate(
        [params["cls"] + params["pos"][0:1],
         params["reg"] + params["pos"][1:1 + REG_TOKENS]], axis=0)     # [5, DIM]
    pos_patch = params["pos"][1 + REG_TOKENS:]                         # [N_PATCH, DIM]

    h = embed(patches, params["patch_w"], params["patch_b"],
              static_prefix, pos_patch)                                # [B, N_PAD, DIM]

    for blk in params["blocks"]:
        h = transformer_block(h, blk)                                  # fused block kernel

    cls_tok, pooled = final_head(h, params["ln_f_g"], params["ln_f_b"])
    cls_tok = cls_tok[:, 0]                                            # [B, DIM]
    if mode == "cls":
        return cls_tok
    elif mode == "full":
        return jnp.concatenate([cls_tok, pooled[:, 0]], axis=-1)       # [B, 2*DIM]
    raise ValueError(mode)


# TODO(synk): pretrained HF checkpoint loading, timm data-config transforms
# (get_transforms) and torch.distributed device selection have no Pallas
# equivalent; weights here are synthetic.

if __name__ == "__main__":
    key = jax.random.PRNGKey(0)
    pkey, xkey = jax.random.split(key)
    params = init_params(pkey)
    x = jax.random.normal(xkey, (2, CHANS, IMG, IMG), dtype=jnp.float32)

    fwd = jax.jit(virchow2_forward, static_argnames=("mode",))
    cls_out = jax.block_until_ready(fwd(params, x, mode="cls"))
    full_out = jax.block_until_ready(fwd(params, x, mode="full"))

    assert cls_out.shape == (2, DIM), cls_out.shape            # 'cls' -> features_dim
    assert full_out.shape == (2, 2 * DIM), full_out.shape      # 'full' -> 2 * features_dim
    assert bool(jnp.all(jnp.isfinite(cls_out)))
    assert bool(jnp.all(jnp.isfinite(full_out)))
    print("KERNEL_OK")
</pallas_src>

<mosaic_0001>
module attributes {stable_mosaic.version = 11 : i64} {
  func.func @_embed_kernel(%arg0: i32, %arg1: memref<1x4x192xf32, #tpu.memory_space<vmem>>, %arg2: memref<192x128xbf16, #tpu.memory_space<vmem>>, %arg3: memref<1x128xf32, #tpu.memory_space<vmem>>, %arg4: memref<5x128xf32, #tpu.memory_space<vmem>>, %arg5: memref<4x128xf32, #tpu.memory_space<vmem>>, %arg6: memref<1x16x128xf32, #tpu.memory_space<vmem>>) attributes {dimension_semantics = [#tpu.dimension_semantics<parallel>], iteration_bounds = array<i64: 2>, scalar_prefetch = 0 : i64, scratch_operands = 0 : i64, tpu.core_type = #tpu.core_type<tc>, window_params = [{transform_indices = @transform_0, window_bounds = array<i64: 1, 4, 192>}, {pipeline_mode = #tpu.pipeline_mode<synchronous>, transform_indices = @transform_1, window_bounds = array<i64: 192, 128>}, {pipeline_mode = #tpu.pipeline_mode<synchronous>, transform_indices = @transform_2, window_bounds = array<i64: 1, 128>}, {pipeline_mode = #tpu.pipeline_mode<synchronous>, transform_indices = @transform_3, window_bounds = array<i64: 5, 128>}, {pipeline_mode = #tpu.pipeline_mode<synchronous>, transform_indices = @transform_4, window_bounds = array<i64: 4, 128>}, {transform_indices = @transform_5, window_bounds = array<i64: 1, 16, 128>}]} {
    %c0 = arith.constant 0 : index
    %c0_0 = arith.constant 0 : index
    %c0_1 = arith.constant 0 : index
    %0 = vector.load %arg1[%c0, %c0_0, %c0_1] : memref<1x4x192xf32, #tpu.memory_space<vmem>>, vector<1x4x192xf32>
    %1 = vector.shape_cast %0 : vector<1x4x192xf32> to vector<4x192xf32>
    %2 = arith.truncf %1 : vector<4x192xf32> to vector<4x192xbf16>
    %c0_2 = arith.constant 0 : index
    %c0_3 = arith.constant 0 : index
    %3 = vector.load %arg2[%c0_2, %c0_3] : memref<192x128xbf16, #tpu.memory_space<vmem>>, vector<192x128xbf16>
    %cst = arith.constant dense<0.000000e+00> : vector<4x128xf32>
    %4 = tpu.matmul %2, %3, %cst {dimension_numbers = #tpu.dot_dimension_numbers<[1], [0], [0], [1], [0, 0, 1, 1], [], []>} : vector<4x192xbf16>, vector<192x128xbf16>, vector<4x128xf32> -> vector<4x128xf32>
    %c0_4 = arith.constant 0 : index
    %c0_5 = arith.constant 0 : index
    %5 = vector.load %arg3[%c0_4, %c0_5] : memref<1x128xf32, #tpu.memory_space<vmem>>, vector<1x128xf32>
    %6 = vector.broadcast %5 : vector<1x128xf32> to vector<4x128xf32>
    %7 = arith.addf %4, %6 : vector<4x128xf32>
    %c0_6 = arith.constant 0 : index
    %c0_7 = arith.constant 0 : index
    %8 = vector.load %arg4[%c0_6, %c0_7] : memref<5x128xf32, #tpu.memory_space<vmem>>, vector<5x128xf32>
    %c0_8 = arith.constant 0 : index
    %c0_9 = arith.constant 0 : index
    %9 = vector.load %arg5[%c0_8, %c0_9] : memref<4x128xf32, #tpu.memory_space<vmem>>, vector<4x128xf32>
    %10 = arith.addf %7, %9 : vector<4x128xf32>
    %cst_10 = arith.constant 0.000000e+00 : f32
    %11 = vector.broadcast %cst_10 : f32 to vector<7x128xf32>
    %12 = tpu.concatenate %8, %10, %11 in 0 : vector<5x128xf32>, vector<4x128xf32>, vector<7x128xf32> -> vector<16x128xf32>
    %c0_11 = arith.constant 0 : index
    %c0_12 = arith.constant 0 : index
    %c0_13 = arith.constant 0 : index
    %13 = vector.load %arg6[%c0_11, %c0_12, %c0_13] : memref<1x16x128xf32, #tpu.memory_space<vmem>>, vector<1x16x128xf32>
    %14 = vector.shape_cast %13 : vector<1x16x128xf32> to vector<16x128xf32>
    %15 = vector.shape_cast %12 : vector<16x128xf32> to vector<1x16x128xf32>
    tpu.vector_store %arg6[%c0_11, %c0_12, %c0_13], %15 {strides = array<i32>} : memref<1x16x128xf32, #tpu.memory_space<vmem>>, vector<1x16x128xf32>,
    return
  }
  func.func @transform_0(%arg0: i32) -> (i32, i32, i32) {
    %c0_i32 = arith.constant 0 : i32
    %c0_i32_0 = arith.constant 0 : i32
    %c0_i32_1 = arith.constant 0 : i32
    return %arg0, %c0_i32, %c0_i32_0 : i32, i32, i32
  }
  func.func @transform_1(%arg0: i32) -> (i32, i32) {
    %c0_i32 = arith.constant 0 : i32
    %c0_i32_0 = arith.constant 0 : i32
    %c0_i32_1 = arith.constant 0 : i32
    return %c0_i32, %c0_i32_0 : i32, i32
  }
  func.func @transform_2(%arg0: i32) -> (i32, i32) {
    %c0_i32 = arith.constant 0 : i32
    %c0_i32_0 = arith.constant 0 : i32
    %c0_i32_1 = arith.constant 0 : i32
    return %c0_i32, %c0_i32_0 : i32, i32
  }
  func.func @transform_3(%arg0: i32) -> (i32, i32) {
    %c0_i32 = arith.constant 0 : i32
    %c0_i32_0 = arith.constant 0 : i32
    %c0_i32_1 = arith.constant 0 : i32
    return %c0_i32, %c0_i32_0 : i32, i32
  }
  func.func @transform_4(%arg0: i32) -> (i32, i32) {
    %c0_i32 = arith.constant 0 : i32
    %c0_i32_0 = arith.constant 0 : i32
    %c0_i32_1 = arith.constant 0 : i32
    return %c0_i32, %c0_i32_0 : i32, i32
  }
  func.func @transform_5(%arg0: i32) -> (i32, i32, i32) {
    %c0_i32 = arith.constant 0 : i32
    %c0_i32_0 = arith.constant 0 : i32
    %c0_i32_1 = arith.constant 0 : i32
    return %arg0, %c0_i32, %c0_i32_0 : i32, i32, i32
  }
}

module attributes {stable_mosaic.version = 11 : i64} {
  func.func @_block_kernel(%arg0: i32, %arg1: memref<1x16x128xf32, #tpu.memory_space<vmem>>, %arg2: memref<1x128xf32, #tpu.memory_space<vmem>>, %arg3: memref<1x128xf32, #tpu.memory_space<vmem>>, %arg4: memref<128x384xbf16, #tpu.memory_space<vmem>>, %arg5: memref<1x384xf32, #tpu.memory_space<vmem>>, %arg6: memref<128x128xbf16, #tpu.memory_space<vmem>>, %arg7: memref<1x128xf32, #tpu.memory_space<vmem>>, %arg8: memref<1x128xf32, #tpu.memory_space<vmem>>, %arg9: memref<1x128xf32, #tpu.memory_space<vmem>>, %arg10: memref<128x512xbf16, #tpu.memory_space<vmem>>, %arg11: memref<1x512xf32, #tpu.memory_space<vmem>>, %arg12: memref<256x128xbf16, #tpu.memory_space<vmem>>, %arg13: memref<1x128xf32, #tpu.memory_space<vmem>>, %arg14: memref<1x16x128xf32, #tpu.memory_space<vmem>>) attributes {dimension_semantics = [#tpu.dimension_semantics<parallel>], iteration_bounds = array<i64: 2>, scalar_prefetch = 0 : i64, scratch_operands = 0 : i64, tpu.core_type = #tpu.core_type<tc>, window_params = [{transform_indices = @transform_0, window_bounds = array<i64: 1, 16, 128>}, {pipeline_mode = #tpu.pipeline_mode<synchronous>, transform_indices = @transform_1, window_bounds = array<i64: 1, 128>}, {pipeline_mode = #tpu.pipeline_mode<synchronous>, transform_indices = @transform_2, window_bounds = array<i64: 1, 128>}, {pipeline_mode = #tpu.pipeline_mode<synchronous>, transform_indices = @transform_3, window_bounds = array<i64: 128, 384>}, {pipeline_mode = #tpu.pipeline_mode<synchronous>, transform_indices = @transform_4, window_bounds = array<i64: 1, 384>}, {pipeline_mode = #tpu.pipeline_mode<synchronous>, transform_indices = @transform_5, window_bounds = array<i64: 128, 128>}, {pipeline_mode = #tpu.pipeline_mode<synchronous>, transform_indices = @transform_6, window_bounds = array<i64: 1, 128>}, {pipeline_mode = #tpu.pipeline_mode<synchronous>, transform_indices = @transform_7, window_bounds = array<i64: 1, 128>}, {pipeline_mode = #tpu.pipeline_mode<synchronous>, transform_indices = @transform_8, window_bounds = array<i64: 1, 128>}, {pipeline_mode = #tpu.pipeline_mode<synchronous>, transform_indices = @transform_9, window_bounds = array<i64: 128, 512>}, {pipeline_mode = #tpu.pipeline_mode<synchronous>, transform_indices = @transform_10, window_bounds = array<i64: 1, 512>}, {pipeline_mode = #tpu.pipeline_mode<synchronous>, transform_indices = @transform_11, window_bounds = array<i64: 256, 128>}, {pipeline_mode = #tpu.pipeline_mode<synchronous>, transform_indices = @transform_12, window_bounds = array<i64: 1, 128>}, {transform_indices = @transform_13, window_bounds = array<i64: 1, 16, 128>}]} {
    %c0 = arith.constant 0 : index
    %c0_0 = arith.constant 0 : index
    %c0_1 = arith.constant 0 : index
    %0 = vector.load %arg1[%c0, %c0_0, %c0_1] : memref<1x16x128xf32, #tpu.memory_space<vmem>>, vector<1x16x128xf32>
    %1 = vector.shape_cast %0 : vector<1x16x128xf32> to vector<16x128xf32>
    %c0_2 = arith.constant 0 : index
    %c0_3 = arith.constant 0 : index
    %2 = vector.load %arg2[%c0_2, %c0_3] : memref<1x128xf32, #tpu.memory_space<vmem>>, vector<1x128xf32>
    %c0_4 = arith.constant 0 : index
    %c0_5 = arith.constant 0 : index
    %3 = vector.load %arg3[%c0_4, %c0_5] : memref<1x128xf32, #tpu.memory_space<vmem>>, vector<1x128xf32>
    %cst = arith.constant dense<0.000000e+00> : vector<16xf32>
    %4 = vector.multi_reduction <add>, %1, %cst [1] : vector<16x128xf32> to vector<16xf32>
    %5 = vector.shape_cast %4 : vector<16xf32> to vector<16x1xf32>
    %cst_6 = arith.constant 1.280000e+02 : f32
    %6 = vector.broadcast %cst_6 : f32 to vector<16x1xf32>
    %7 = arith.divf %5, %6 : vector<16x1xf32>
    %8 = vector.broadcast %7 : vector<16x1xf32> to vector<16x128xf32>
    %9 = arith.subf %1, %8 : vector<16x128xf32>
    %10 = arith.mulf %9, %9 : vector<16x128xf32>
    %cst_7 = arith.constant dense<0.000000e+00> : vector<16xf32>
    %11 = vector.multi_reduction <add>, %10, %cst_7 [1] : vector<16x128xf32> to vector<16xf32>
    %12 = vector.shape_cast %11 : vector<16xf32> to vector<16x1xf32>
    %cst_8 = arith.constant 1.280000e+02 : f32
    %13 = vector.broadcast %cst_8 : f32 to vector<16x1xf32>
    %14 = arith.divf %12, %13 : vector<16x1xf32>
    %cst_9 = arith.constant 9.99999997E-7 : f32
    %15 = vector.broadcast %cst_9 : f32 to vector<16x1xf32>
    %16 = arith.addf %14, %15 : vector<16x1xf32>
    %17 = math.rsqrt %16 : vector<16x1xf32>
    %18 = vector.broadcast %17 : vector<16x1xf32> to vector<16x128xf32>
    %19 = arith.mulf %9, %18 : vector<16x128xf32>
    %20 = vector.broadcast %2 : vector<1x128xf32> to vector<16x128xf32>
    %21 = arith.mulf %19, %20 : vector<16x128xf32>
    %22 = vector.broadcast %3 : vector<1x128xf32> to vector<16x128xf32>
    %23 = arith.addf %21, %22 : vector<16x128xf32>
    %24 = arith.truncf %23 : vector<16x128xf32> to vector<16x128xbf16>
    %c0_10 = arith.constant 0 : index
    %c0_11 = arith.constant 0 : index
    %25 = vector.load %arg4[%c0_10, %c0_11] : memref<128x384xbf16, #tpu.memory_space<vmem>>, vector<128x384xbf16>
    %cst_12 = arith.constant dense<0.000000e+00> : vector<16x384xf32>
    %26 = tpu.matmul %24, %25, %cst_12 {dimension_numbers = #tpu.dot_dimension_numbers<[1], [0], [0], [1], [0, 0, 1, 1], [], []>} : vector<16x128xbf16>, vector<128x384xbf16>, vector<16x384xf32> -> vector<16x384xf32>
    %c0_13 = arith.constant 0 : index
    %c0_14 = arith.constant 0 : index
    %27 = vector.load %arg5[%c0_13, %c0_14] : memref<1x384xf32, #tpu.memory_space<vmem>>, vector<1x384xf32>
    %28 = vector.broadcast %27 : vector<1x384xf32> to vector<16x384xf32>
    %29 = arith.addf %26, %28 : vector<16x384xf32>
    %30 = tpu.iota {dimensions = array<i32: 1>} : vector<16x16xi32>
    %c9_i32 = arith.constant 9 : i32
    %31 = vector.broadcast %c9_i32 : i32 to vector<16x16xi32>
    %32 = arith.cmpi slt, %30, %31 : vector<16x16xi32>
    %33 = vector.extract_strided_slice %29 {offsets = [0, 0], sizes = [16, 32], strides = [1, 1]} : vector<16x384xf32> to vector<16x32xf32>
    %34 = vector.extract_strided_slice %29 {offsets = [0, 128], sizes = [16, 32], strides = [1, 1]} : vector<16x384xf32> to vector<16x32xf32>
    %35 = vector.extract_strided_slice %29 {offsets = [0, 256], sizes = [16, 32], strides = [1, 1]} : vector<16x384xf32> to vector<16x32xf32>
    %36 = tpu.transpose %34, [1, 0] : vector<16x32xf32> -> vector<32x16xf32>
    %cst_15 = arith.constant dense<0.000000e+00> : vector<16x16xf32>
    %37 = tpu.matmul %33, %36, %cst_15 {dimension_numbers = #tpu.dot_dimension_numbers<[1], [0], [0], [1], [0, 0, 1, 1], [], []>} : vector<16x32xf32>, vector<32x16xf32>, vector<16x16xf32> -> vector<16x16xf32>
    %cst_16 = arith.constant 0.176776692 : f32
    %38 = vector.broadcast %cst_16 : f32 to vector<16x16xf32>
    %39 = arith.mulf %37, %38 : vector<16x16xf32>
    %cst_17 = arith.constant -1.000000e+30 : f32
    %40 = vector.broadcast %cst_17 : f32 to vector<16x16xf32>
    %41 = arith.select %32, %39, %40 : vector<16x16xi1>, vector<16x16xf32>
    %cst_18 = arith.constant dense<0xFF800000> : vector<16xf32>
    %42 = vector.multi_reduction <maximumf>, %41, %cst_18 [1] : vector<16x16xf32> to vector<16xf32>
    %43 = vector.shape_cast %42 : vector<16xf32> to vector<16x1xf32>
    %44 = vector.broadcast %43 : vector<16x1xf32> to vector<16x16xf32>
    %45 = arith.subf %41, %44 : vector<16x16xf32>
    %46 = math.exp %45 : vector<16x16xf32>
    %cst_19 = arith.constant dense<0.000000e+00> : vector<16xf32>
    %47 = vector.multi_reduction <add>, %46, %cst_19 [1] : vector<16x16xf32> to vector<16xf32>
    %48 = vector.shape_cast %47 : vector<16xf32> to vector<16x1xf32>
    %49 = tpu.reciprocal %48 {approx = true} : vector<16x1xf32> -> vector<16x1xf32>
    %50 = vector.broadcast %49 : vector<16x1xf32> to vector<16x16xf32>
    %51 = arith.mulf %46, %50 : vector<16x16xf32>
    %cst_20 = arith.constant dense<0.000000e+00> : vector<16x32xf32>
    %52 = tpu.matmul %51, %35, %cst_20 {dimension_numbers = #tpu.dot_dimension_numbers<[1], [0], [0], [1], [0, 0, 1, 1], [], []>} : vector<16x16xf32>, vector<16x32xf32>, vector<16x32xf32> -> vector<16x32xf32>
    %53 = vector.extract_strided_slice %29 {offsets = [0, 32], sizes = [16, 32], strides = [1, 1]} : vector<16x384xf32> to vector<16x32xf32>
    %54 = vector.extract_strided_slice %29 {offsets = [0, 160], sizes = [16, 32], strides = [1, 1]} : vector<16x384xf32> to vector<16x32xf32>
    %55 = vector.extract_strided_slice %29 {offsets = [0, 288], sizes = [16, 32], strides = [1, 1]} : vector<16x384xf32> to vector<16x32xf32>
    %56 = tpu.transpose %54, [1, 0] : vector<16x32xf32> -> vector<32x16xf32>
    %cst_21 = arith.constant dense<0.000000e+00> : vector<16x16xf32>
    %57 = tpu.matmul %53, %56, %cst_21 {dimension_numbers = #tpu.dot_dimension_numbers<[1], [0], [0], [1], [0, 0, 1, 1], [], []>} : vector<16x32xf32>, vector<32x16xf32>, vector<16x16xf32> -> vector<16x16xf32>
    %cst_22 = arith.constant 0.176776692 : f32
    %58 = vector.broadcast %cst_22 : f32 to vector<16x16xf32>
    %59 = arith.mulf %57, %58 : vector<16x16xf32>
    %cst_23 = arith.constant -1.000000e+30 : f32
    %60 = vector.broadcast %cst_23 : f32 to vector<16x16xf32>
    %61 = arith.select %32, %59, %60 : vector<16x16xi1>, vector<16x16xf32>
    %cst_24 = arith.constant dense<0xFF800000> : vector<16xf32>
    %62 = vector.multi_reduction <maximumf>, %61, %cst_24 [1] : vector<16x16xf32> to vector<16xf32>
    %63 = vector.shape_cast %62 : vector<16xf32> to vector<16x1xf32>
    %64 = vector.broadcast %63 : vector<16x1xf32> to vector<16x16xf32>
    %65 = arith.subf %61, %64 : vector<16x16xf32>
    %66 = math.exp %65 : vector<16x16xf32>
    %cst_25 = arith.constant dense<0.000000e+00> : vector<16xf32>
    %67 = vector.multi_reduction <add>, %66, %cst_25 [1] : vector<16x16xf32> to vector<16xf32>
    %68 = vector.shape_cast %67 : vector<16xf32> to vector<16x1xf32>
    %69 = tpu.reciprocal %68 {approx = true} : vector<16x1xf32> -> vector<16x1xf32>
    %70 = vector.broadcast %69 : vector<16x1xf32> to vector<16x16xf32>
    %71 = arith.mulf %66, %70 : vector<16x16xf32>
    %cst_26 = arith.constant dense<0.000000e+00> : vector<16x32xf32>
    %72 = tpu.matmul %71, %55, %cst_26 {dimension_numbers = #tpu.dot_dimension_numbers<[1], [0], [0], [1], [0, 0, 1, 1], [], []>} : vector<16x16xf32>, vector<16x32xf32>, vector<16x32xf32> -> vector<16x32xf32>
    %73 = vector.extract_strided_slice %29 {offsets = [0, 64], sizes = [16, 32], strides = [1, 1]} : vector<16x384xf32> to vector<16x32xf32>
    %74 = vector.extract_strided_slice %29 {offsets = [0, 192], sizes = [16, 32], strides = [1, 1]} : vector<16x384xf32> to vector<16x32xf32>
    %75 = vector.extract_strided_slice %29 {offsets = [0, 320], sizes = [16, 32], strides = [1, 1]} : vector<16x384xf32> to vector<16x32xf32>
    %76 = tpu.transpose %74, [1, 0] : vector<16x32xf32> -> vector<32x16xf32>
    %cst_27 = arith.constant dense<0.000000e+00> : vector<16x16xf32>
    %77 = tpu.matmul %73, %76, %cst_27 {dimension_numbers = #tpu.dot_dimension_numbers<[1], [0], [0], [1], [0, 0, 1, 1], [], []>} : vector<16x32xf32>, vector<32x16xf32>, vector<16x16xf32> -> vector<16x16xf32>
    %cst_28 = arith.constant 0.176776692 : f32
    %78 = vector.broadcast %cst_28 : f32 to vector<16x16xf32>
    %79 = arith.mulf %77, %78 : vector<16x16xf32>
    %cst_29 = arith.constant -1.000000e+30 : f32
    %80 = vector.broadcast %cst_29 : f32 to vector<16x16xf32>
    %81 = arith.select %32, %79, %80 : vector<16x16xi1>, vector<16x16xf32>
    %cst_30 = arith.constant dense<0xFF800000> : vector<16xf32>
    %82 = vector.multi_reduction <maximumf>, %81, %cst_30 [1] : vector<16x16xf32> to vector<16xf32>
    %83 = vector.shape_cast %82 : vector<16xf32> to vector<16x1xf32>
    %84 = vector.broadcast %83 : vector<16x1xf32> to vector<16x16xf32>
    %85 = arith.subf %81, %84 : vector<16x16xf32>
    %86 = math.exp %85 : vector<16x16xf32>
    %cst_31 = arith.constant dense<0.000000e+00> : vector<16xf32>
    %87 = vector.multi_reduction <add>, %86, %cst_31 [1] : vector<16x16xf32> to vector<16xf32>
    %88 = vector.shape_cast %87 : vector<16xf32> to vector<16x1xf32>
    %89 = tpu.reciprocal %88 {approx = true} : vector<16x1xf32> -> vector<16x1xf32>
    %90 = vector.broadcast %89 : vector<16x1xf32> to vector<16x16xf32>
    %91 = arith.mulf %86, %90 : vector<16x16xf32>
    %cst_32 = arith.constant dense<0.000000e+00> : vector<16x32xf32>
    %92 = tpu.matmul %91, %75, %cst_32 {dimension_numbers = #tpu.dot_dimension_numbers<[1], [0], [0], [1], [0, 0, 1, 1], [], []>} : vector<16x16xf32>, vector<16x32xf32>, vector<16x32xf32> -> vector<16x32xf32>
    %93 = vector.extract_strided_slice %29 {offsets = [0, 96], sizes = [16, 32], strides = [1, 1]} : vector<16x384xf32> to vector<16x32xf32>
    %94 = vector.extract_strided_slice %29 {offsets = [0, 224], sizes = [16, 32], strides = [1, 1]} : vector<16x384xf32> to vector<16x32xf32>
    %95 = vector.extract_strided_slice %29 {offsets = [0, 352], sizes = [16, 32], strides = [1, 1]} : vector<16x384xf32> to vector<16x32xf32>
    %96 = tpu.transpose %94, [1, 0] : vector<16x32xf32> -> vector<32x16xf32>
    %cst_33 = arith.constant dense<0.000000e+00> : vector<16x16xf32>
    %97 = tpu.matmul %93, %96, %cst_33 {dimension_numbers = #tpu.dot_dimension_numbers<[1], [0], [0], [1], [0, 0, 1, 1], [], []>} : vector<16x32xf32>, vector<32x16xf32>, vector<16x16xf32> -> vector<16x16xf32>
    %cst_34 = arith.constant 0.176776692 : f32
    %98 = vector.broadcast %cst_34 : f32 to vector<16x16xf32>
    %99 = arith.mulf %97, %98 : vector<16x16xf32>
    %cst_35 = arith.constant -1.000000e+30 : f32
    %100 = vector.broadcast %cst_35 : f32 to vector<16x16xf32>
    %101 = arith.select %32, %99, %100 : vector<16x16xi1>, vector<16x16xf32>
    %cst_36 = arith.constant dense<0xFF800000> : vector<16xf32>
    %102 = vector.multi_reduction <maximumf>, %101, %cst_36 [1] : vector<16x16xf32> to vector<16xf32>
    %103 = vector.shape_cast %102 : vector<16xf32> to vector<16x1xf32>
    %104 = vector.broadcast %103 : vector<16x1xf32> to vector<16x16xf32>
    %105 = arith.subf %101, %104 : vector<16x16xf32>
    %106 = math.exp %105 : vector<16x16xf32>
    %cst_37 = arith.constant dense<0.000000e+00> : vector<16xf32>
    %107 = vector.multi_reduction <add>, %106, %cst_37 [1] : vector<16x16xf32> to vector<16xf32>
    %108 = vector.shape_cast %107 : vector<16xf32> to vector<16x1xf32>
    %109 = tpu.reciprocal %108 {approx = true} : vector<16x1xf32> -> vector<16x1xf32>
    %110 = vector.broadcast %109 : vector<16x1xf32> to vector<16x16xf32>
    %111 = arith.mulf %106, %110 : vector<16x16xf32>
    %cst_38 = arith.constant dense<0.000000e+00> : vector<16x32xf32>
    %112 = tpu.matmul %111, %95, %cst_38 {dimension_numbers = #tpu.dot_dimension_numbers<[1], [0], [0], [1], [0, 0, 1, 1], [], []>} : vector<16x16xf32>, vector<16x32xf32>, vector<16x32xf32> -> vector<16x32xf32>
    %113 = tpu.concatenate %52, %72, %92, %112 in 1 : vector<16x32xf32>, vector<16x32xf32>, vector<16x32xf32>, vector<16x32xf32> -> vector<16x128xf32>
    %114 = arith.truncf %113 : vector<16x128xf32> to vector<16x128xbf16>
    %c0_39 = arith.constant 0 : index
    %c0_40 = arith.constant 0 : index
    %115 = vector.load %arg6[%c0_39, %c0_40] : memref<128x128xbf16, #tpu.memory_space<vmem>>, vector<128x128xbf16>
    %cst_41 = arith.constant dense<0.000000e+00> : vector<16x128xf32>
    %116 = tpu.matmul %114, %115, %cst_41 {dimension_numbers = #tpu.dot_dimension_numbers<[1], [0], [0], [1], [0, 0, 1, 1], [], []>} : vector<16x128xbf16>, vector<128x128xbf16>, vector<16x128xf32> -> vector<16x128xf32>
    %117 = arith.addf %1, %116 : vector<16x128xf32>
    %c0_42 = arith.constant 0 : index
    %c0_43 = arith.constant 0 : index
    %118 = vector.load %arg7[%c0_42, %c0_43] : memref<1x128xf32, #tpu.memory_space<vmem>>, vector<1x128xf32>
    %119 = vector.broadcast %118 : vector<1x128xf32> to vector<16x128xf32>
    %120 = arith.addf %117, %119 : vector<16x128xf32>
    %c0_44 = arith.constant 0 : index
    %c0_45 = arith.constant 0 : index
    %121 = vector.load %arg8[%c0_44, %c0_45] : memref<1x128xf32, #tpu.memory_space<vmem>>, vector<1x128xf32>
    %c0_46 = arith.constant 0 : index
    %c0_47 = arith.constant 0 : index
    %122 = vector.load %arg9[%c0_46, %c0_47] : memref<1x128xf32, #tpu.memory_space<vmem>>, vector<1x128xf32>
    %cst_48 = arith.constant dense<0.000000e+00> : vector<16xf32>
    %123 = vector.multi_reduction <add>, %120, %cst_48 [1] : vector<16x128xf32> to vector<16xf32>
    %124 = vector.shape_cast %123 : vector<16xf32> to vector<16x1xf32>
    %cst_49 = arith.constant 1.280000e+02 : f32
    %125 = vector.broadcast %cst_49 : f32 to vector<16x1xf32>
    %126 = arith.divf %124, %125 : vector<16x1xf32>
    %127 = vector.broadcast %126 : vector<16x1xf32> to vector<16x128xf32>
    %128 = arith.subf %120, %127 : vector<16x128xf32>
    %129 = arith.mulf %128, %128 : vector<16x128xf32>
    %cst_50 = arith.constant dense<0.000000e+00> : vector<16xf32>
    %130 = vector.multi_reduction <add>, %129, %cst_50 [1] : vector<16x128xf32> to vector<16xf32>
    %131 = vector.shape_cast %130 : vector<16xf32> to vector<16x1xf32>
    %cst_51 = arith.constant 1.280000e+02 : f32
    %132 = vector.broadcast %cst_51 : f32 to vector<16x1xf32>
    %133 = arith.divf %131, %132 : vector<16x1xf32>
    %cst_52 = arith.constant 9.99999997E-7 : f32
    %134 = vector.broadcast %cst_52 : f32 to vector<16x1xf32>
    %135 = arith.addf %133, %134 : vector<16x1xf32>
    %136 = math.rsqrt %135 : vector<16x1xf32>
    %137 = vector.broadcast %136 : vector<16x1xf32> to vector<16x128xf32>
    %138 = arith.mulf %128, %137 : vector<16x128xf32>
    %139 = vector.broadcast %121 : vector<1x128xf32> to vector<16x128xf32>
    %140 = arith.mulf %138, %139 : vector<16x128xf32>
    %141 = vector.broadcast %122 : vector<1x128xf32> to vector<16x128xf32>
    %142 = arith.addf %140, %141 : vector<16x128xf32>
    %143 = arith.truncf %142 : vector<16x128xf32> to vector<16x128xbf16>
    %c0_53 = arith.constant 0 : index
    %c0_54 = arith.constant 0 : index
    %144 = vector.load %arg10[%c0_53, %c0_54] : memref<128x512xbf16, #tpu.memory_space<vmem>>, vector<128x512xbf16>
    %cst_55 = arith.constant dense<0.000000e+00> : vector<16x512xf32>
    %145 = tpu.matmul %143, %144, %cst_55 {dimension_numbers = #tpu.dot_dimension_numbers<[1], [0], [0], [1], [0, 0, 1, 1], [], []>} : vector<16x128xbf16>, vector<128x512xbf16>, vector<16x512xf32> -> vector<16x512xf32>
    %c0_56 = arith.constant 0 : index
    %c0_57 = arith.constant 0 : index
    %146 = vector.load %arg11[%c0_56, %c0_57] : memref<1x512xf32, #tpu.memory_space<vmem>>, vector<1x512xf32>
    %147 = vector.broadcast %146 : vector<1x512xf32> to vector<16x512xf32>
    %148 = arith.addf %145, %147 : vector<16x512xf32>
    %149 = vector.extract_strided_slice %148 {offsets = [0, 0], sizes = [16, 256], strides = [1, 1]} : vector<16x512xf32> to vector<16x256xf32>
    %150 = vector.extract_strided_slice %148 {offsets = [0, 256], sizes = [16, 256], strides = [1, 1]} : vector<16x512xf32> to vector<16x256xf32>
    %151 = arith.negf %149 : vector<16x256xf32>
    %152 = math.exp %151 : vector<16x256xf32>
    %cst_58 = arith.constant 1.000000e+00 : f32
    %153 = vector.broadcast %cst_58 : f32 to vector<16x256xf32>
    %154 = arith.addf %153, %152 : vector<16x256xf32>
    %155 = arith.divf %153, %154 : vector<16x256xf32>
    %156 = arith.mulf %149, %155 : vector<16x256xf32>
    %157 = arith.mulf %156, %150 : vector<16x256xf32>
    %158 = arith.truncf %157 : vector<16x256xf32> to vector<16x256xbf16>
    %c0_59 = arith.constant 0 : index
    %c0_60 = arith.constant 0 : index
    %159 = vector.load %arg12[%c0_59, %c0_60] : memref<256x128xbf16, #tpu.memory_space<vmem>>, vector<256x128xbf16>
    %cst_61 = arith.constant dense<0.000000e+00> : vector<16x128xf32>
    %160 = tpu.matmul %158, %159, %cst_61 {dimension_numbers = #tpu.dot_dimension_numbers<[1], [0], [0], [1], [0, 0, 1, 1], [], []>} : vector<16x256xbf16>, vector<256x128xbf16>, vector<16x128xf32> -> vector<16x128xf32>
    %161 = arith.addf %120, %160 : vector<16x128xf32>
    %c0_62 = arith.constant 0 : index
    %c0_63 = arith.constant 0 : index
    %162 = vector.load %arg13[%c0_62, %c0_63] : memref<1x128xf32, #tpu.memory_space<vmem>>, vector<1x128xf32>
    %163 = vector.broadcast %162 : vector<1x128xf32> to vector<16x128xf32>
    %164 = arith.addf %161, %163 : vector<16x128xf32>
    %c0_64 = arith.constant 0 : index
    %c0_65 = arith.constant 0 : index
    %c0_66 = arith.constant 0 : index
    %165 = vector.load %arg14[%c0_64, %c0_65, %c0_66] : memref<1x16x128xf32, #tpu.memory_space<vmem>>, vector<1x16x128xf32>
    %166 = vector.shape_cast %165 : vector<1x16x128xf32> to vector<16x128xf32>
    %167 = vector.shape_cast %164 : vector<16x128xf32> to vector<1x16x128xf32>
    tpu.vector_store %arg14[%c0_64, %c0_65, %c0_66], %167 {strides = array<i32>} : memref<1x16x128xf32, #tpu.memory_space<vmem>>, vector<1x16x128xf32>,
    return
  }
  func.func @transform_0(%arg0: i32) -> (i32, i32, i32) {
    %c0_i32 = arith.constant 0 : i32
    %c0_i32_0 = arith.constant 0 : i32
    %c0_i32_1 = arith.constant 0 : i32
    return %arg0, %c0_i32, %c0_i32_0 : i32, i32, i32
  }
  func.func @transform_1(%arg0: i32) -> (i32, i32) {
    %c0_i32 = arith.constant 0 : i32
    %c0_i32_0 = arith.constant 0 : i32
    %c0_i32_1 = arith.constant 0 : i32
    return %c0_i32, %c0_i32_0 : i32, i32
  }
  func.func @transform_2(%arg0: i32) -> (i32, i32) {
    %c0_i32 = arith.constant 0 : i32
    %c0_i32_0 = arith.constant 0 : i32
    %c0_i32_1 = arith.constant 0 : i32
    return %c0_i32, %c0_i32_0 : i32, i32
  }
  func.func @transform_3(%arg0: i32) -> (i32, i32) {
    %c0_i32 = arith.constant 0 : i32
    %c0_i32_0 = arith.constant 0 : i32
    %c0_i32_1 = arith.constant 0 : i32
    return %c0_i32, %c0_i32_0 : i32, i32
  }
  func.func @transform_4(%arg0: i32) -> (i32, i32) {
    %c0_i32 = arith.constant 0 : i32
    %c0_i32_0 = arith.constant 0 : i32
    %c0_i32_1 = arith.constant 0 : i32
    return %c0_i32, %c0_i32_0 : i32, i32
  }
  func.func @transform_5(%arg0: i32) -> (i32, i32) {
    %c0_i32 = arith.constant 0 : i32
    %c0_i32_0 = arith.constant 0 : i32
    %c0_i32_1 = arith.constant 0 : i32
    return %c0_i32, %c0_i32_0 : i32, i32
  }
  func.func @transform_6(%arg0: i32) -> (i32, i32) {
    %c0_i32 = arith.constant 0 : i32
    %c0_i32_0 = arith.constant 0 : i32
    %c0_i32_1 = arith.constant 0 : i32
    return %c0_i32, %c0_i32_0 : i32, i32
  }
  func.func @transform_7(%arg0: i32) -> (i32, i32) {
    %c0_i32 = arith.constant 0 : i32
    %c0_i32_0 = arith.constant 0 : i32
    %c0_i32_1 = arith.constant 0 : i32
    return %c0_i32, %c0_i32_0 : i32, i32
  }
  func.func @transform_8(%arg0: i32) -> (i32, i32) {
    %c0_i32 = arith.constant 0 : i32
    %c0_i32_0 = arith.constant 0 : i32
    %c0_i32_1 = arith.constant 0 : i32
    return %c0_i32, %c0_i32_0 : i32, i32
  }
  func.func @transform_9(%arg0: i32) -> (i32, i32) {
    %c0_i32 = arith.constant 0 : i32
    %c0_i32_0 = arith.constant 0 : i32
    %c0_i32_1 = arith.constant 0 : i32
    return %c0_i32, %c0_i32_0 : i32, i32
  }
  func.func @transform_10(%arg0: i32) -> (i32, i32) {
    %c0_i32 = arith.constant 0 : i32
    %c0_i32_0 = arith.constant 0 : i32
    %c0_i32_1 = arith.constant 0 : i32
    return %c0_i32, %c0_i32_0 : i32, i32
  }
  func.func @transform_11(%arg0: i32) -> (i32, i32) {
    %c0_i32 = arith.constant 0 : i32
    %c0_i32_0 = arith.constant 0 : i32
    %c0_i32_1 = arith.constant 0 : i32
    return %c0_i32, %c0_i32_0 : i32, i32
  }
  func.func @transform_12(%arg0: i32) -> (i32, i32) {
    %c0_i32 = arith.constant 0 : i32
    %c0_i32_0 = arith.constant 0 : i32
    %c0_i32_1 = arith.constant 0 : i32
    return %c0_i32, %c0_i32_0 : i32, i32
  }
  func.func @transform_13(%arg0: i32) -> (i32, i32, i32) {
    %c0_i32 = arith.constant 0 : i32
    %c0_i32_0 = arith.constant 0 : i32
    %c0_i32_1 = arith.constant 0 : i32
    return %arg0, %c0_i32, %c0_i32_0 : i32, i32, i32
  }
}

module attributes {stable_mosaic.version = 11 : i64} {
  func.func @_final_kernel(%arg0: i32, %arg1: memref<1x16x128xf32, #tpu.memory_space<vmem>>, %arg2: memref<1x128xf32, #tpu.memory_space<vmem>>, %arg3: memref<1x128xf32, #tpu.memory_space<vmem>>, %arg4: memref<1x1x128xf32, #tpu.memory_space<vmem>>, %arg5: memref<1x1x128xf32, #tpu.memory_space<vmem>>) attributes {dimension_semantics = [#tpu.dimension_semantics<parallel>], iteration_bounds = array<i64: 2>, scalar_prefetch = 0 : i64, scratch_operands = 0 : i64, tpu.core_type = #tpu.core_type<tc>, window_params = [{transform_indices = @transform_0, window_bounds = array<i64: 1, 16, 128>}, {pipeline_mode = #tpu.pipeline_mode<synchronous>, transform_indices = @transform_1, window_bounds = array<i64: 1, 128>}, {pipeline_mode = #tpu.pipeline_mode<synchronous>, transform_indices = @transform_2, window_bounds = array<i64: 1, 128>}, {transform_indices = @transform_3, window_bounds = array<i64: 1, 1, 128>}, {transform_indices = @transform_4, window_bounds = array<i64: 1, 1, 128>}]} {
    %c0 = arith.constant 0 : index
    %c0_0 = arith.constant 0 : index
    %c0_1 = arith.constant 0 : index
    %0 = vector.load %arg1[%c0, %c0_0, %c0_1] : memref<1x16x128xf32, #tpu.memory_space<vmem>>, vector<1x16x128xf32>
    %1 = vector.shape_cast %0 : vector<1x16x128xf32> to vector<16x128xf32>
    %c0_2 = arith.constant 0 : index
    %c0_3 = arith.constant 0 : index
    %2 = vector.load %arg2[%c0_2, %c0_3] : memref<1x128xf32, #tpu.memory_space<vmem>>, vector<1x128xf32>
    %c0_4 = arith.constant 0 : index
    %c0_5 = arith.constant 0 : index
    %3 = vector.load %arg3[%c0_4, %c0_5] : memref<1x128xf32, #tpu.memory_space<vmem>>, vector<1x128xf32>
    %cst = arith.constant dense<0.000000e+00> : vector<16xf32>
    %4 = vector.multi_reduction <add>, %1, %cst [1] : vector<16x128xf32> to vector<16xf32>
    %5 = vector.shape_cast %4 : vector<16xf32> to vector<16x1xf32>
    %cst_6 = arith.constant 1.280000e+02 : f32
    %6 = vector.broadcast %cst_6 : f32 to vector<16x1xf32>
    %7 = arith.divf %5, %6 : vector<16x1xf32>
    %8 = vector.broadcast %7 : vector<16x1xf32> to vector<16x128xf32>
    %9 = arith.subf %1, %8 : vector<16x128xf32>
    %10 = arith.mulf %9, %9 : vector<16x128xf32>
    %cst_7 = arith.constant dense<0.000000e+00> : vector<16xf32>
    %11 = vector.multi_reduction <add>, %10, %cst_7 [1] : vector<16x128xf32> to vector<16xf32>
    %12 = vector.shape_cast %11 : vector<16xf32> to vector<16x1xf32>
    %cst_8 = arith.constant 1.280000e+02 : f32
    %13 = vector.broadcast %cst_8 : f32 to vector<16x1xf32>
    %14 = arith.divf %12, %13 : vector<16x1xf32>
    %cst_9 = arith.constant 9.99999997E-7 : f32
    %15 = vector.broadcast %cst_9 : f32 to vector<16x1xf32>
    %16 = arith.addf %14, %15 : vector<16x1xf32>
    %17 = math.rsqrt %16 : vector<16x1xf32>
    %18 = vector.broadcast %17 : vector<16x1xf32> to vector<16x128xf32>
    %19 = arith.mulf %9, %18 : vector<16x128xf32>
    %20 = vector.broadcast %2 : vector<1x128xf32> to vector<16x128xf32>
    %21 = arith.mulf %19, %20 : vector<16x128xf32>
    %22 = vector.broadcast %3 : vector<1x128xf32> to vector<16x128xf32>
    %23 = arith.addf %21, %22 : vector<16x128xf32>
    %24 = vector.extract_strided_slice %23 {offsets = [0, 0], sizes = [1, 128], strides = [1, 1]} : vector<16x128xf32> to vector<1x128xf32>
    %c0_10 = arith.constant 0 : index
    %c0_11 = arith.constant 0 : index
    %c0_12 = arith.constant 0 : index
    %25 = vector.load %arg4[%c0_10, %c0_11, %c0_12] : memref<1x1x128xf32, #tpu.memory_space<vmem>>, vector<1x1x128xf32>
    %26 = vector.shape_cast %25 : vector<1x1x128xf32> to vector<1x128xf32>
    %27 = vector.shape_cast %24 : vector<1x128xf32> to vector<1x1x128xf32>
    tpu.vector_store %arg4[%c0_10, %c0_11, %c0_12], %27 {strides = array<i32>} : memref<1x1x128xf32, #tpu.memory_space<vmem>>, vector<1x1x128xf32>,
    %28 = tpu.iota {dimensions = array<i32: 0>} : vector<16x128xi32>
    %c5_i32 = arith.constant 5 : i32
    %29 = vector.broadcast %c5_i32 : i32 to vector<16x128xi32>
    %30 = arith.cmpi sge, %28, %29 : vector<16x128xi32>
    %c9_i32 = arith.constant 9 : i32
    %31 = vector.broadcast %c9_i32 : i32 to vector<16x128xi32>
    %32 = arith.cmpi slt, %28, %31 : vector<16x128xi32>
    %33 = arith.andi %30, %32 : vector<16x128xi1>
    %cst_13 = arith.constant 0.000000e+00 : f32
    %34 = vector.broadcast %cst_13 : f32 to vector<16x128xf32>
    %35 = arith.select %33, %23, %34 : vector<16x128xi1>, vector<16x128xf32>
    %cst_14 = arith.constant dense<0.000000e+00> : vector<128xf32>
    %36 = vector.multi_reduction <add>, %35, %cst_14 [0] : vector<16x128xf32> to vector<128xf32>
    %37 = vector.shape_cast %36 : vector<128xf32> to vector<1x128xf32>
    %cst_15 = arith.constant 2.500000e-01 : f32
    %38 = vector.broadcast %cst_15 : f32 to vector<1x128xf32>
    %39 = arith.mulf %37, %38 : vector<1x128xf32>
    %c0_16 = arith.constant 0 : index
    %c0_17 = arith.constant 0 : index
    %c0_18 = arith.constant 0 : index
    %40 = vector.load %arg5[%c0_16, %c0_17, %c0_18] : memref<1x1x128xf32, #tpu.memory_space<vmem>>, vector<1x1x128xf32>
    %41 = vector.shape_cast %40 : vector<1x1x128xf32> to vector<1x128xf32>
    %42 = vector.shape_cast %39 : vector<1x128xf32> to vector<1x1x128xf32>
    tpu.vector_store %arg5[%c0_16, %c0_17, %c0_18], %42 {strides = array<i32>} : memref<1x1x128xf32, #tpu.memory_space<vmem>>, vector<1x1x128xf32>,
    return
  }
  func.func @transform_0(%arg0: i32) -> (i32, i32, i32) {
    %c0_i32 = arith.constant 0 : i32
    %c0_i32_0 = arith.constant 0 : i32
    %c0_i32_1 = arith.constant 0 : i32
    return %arg0, %c0_i32, %c0_i32_0 : i32, i32, i32
  }
  func.func @transform_1(%arg0: i32) -> (i32, i32) {
    %c0_i32 = arith.constant 0 : i32
    %c0_i32_0 = arith.constant 0 : i32
    %c0_i32_1 = arith.constant 0 : i32
    return %c0_i32, %c0_i32_0 : i32, i32
  }
  func.func @transform_2(%arg0: i32) -> (i32, i32) {
    %c0_i32 = arith.constant 0 : i32
    %c0_i32_0 = arith.constant 0 : i32
    %c0_i32_1 = arith.constant 0 : i32
    return %c0_i32, %c0_i32_0 : i32, i32
  }
  func.func @transform_3(%arg0: i32) -> (i32, i32, i32) {
    %c0_i32 = arith.constant 0 : i32
    %c0_i32_0 = arith.constant 0 : i32
    %c0_i32_1 = arith.constant 0 : i32
    return %arg0, %c0_i32, %c0_i32_0 : i32, i32, i32
  }
  func.func @transform_4(%arg0: i32) -> (i32, i32, i32) {
    %c0_i32 = arith.constant 0 : i32
    %c0_i32_0 = arith.constant 0 : i32
    %c0_i32_1 = arith.constant 0 : i32
    return %arg0, %c0_i32, %c0_i32_0 : i32, i32, i32
  }
}

</mosaic_0001>

<bundles_post_ra>
// kernel: virchow2_forward.7
= control target key start
LH: loop header
LB: loop body
LE: loop exit
PB: predicated region body
PF: predicated region fallthrough
CT: control target
= control target key end

     0   :  { %10 = vsyncpa [#allocation3], 0  ;;  %s694_s0 = inlined_call_operand.vmem [shape: f32[2,16,128], index: 0, kind: input, shape index: {}]   ;;  %s695_s1 = inlined_call_operand.vmem [shape: f32[1,128], index: 1, kind: input, shape index: {}]   ;;  %s696_s2 = inlined_call_operand.vmem [shape: f32[1,128], index: 2, kind: input, shape index: {}]   ;;  %s697_s3 = inlined_call_operand.hbm [shape: f32[2,1,128], index: 3, kind: output, shape index: {0}]   ;;  %s698_s4 = inlined_call_operand.hbm [shape: f32[2,1,128], index: 4, kind: output, shape index: {1}]  }
   0x1   :  { %12 = vsyncpa [#allocation3 + $0x1], 0 }
   0x2   :  { %13 = vsyncpa [#allocation5], 0 }
   0x3   :  { %15 = vsyncpa [#allocation5 + $0x1], 0  ;;  %s562_s15 = smov 0   ;;  %s564_s16 = smov 0  }
   0x4   :  { %s566_s17 = smov 0   ;;  %s568_s18 = smov 0  }
   0x5 LB: > { %s583_s19 = sadd.s32 4294967295, %s533_s18   ;;  %s382_s20 = sadd.s32 4294967294, %s533_s18   ;;  %s533_s18 = sphi %s568_s18, %s704_s18   ;;  %s529_s17 = sphi %s566_s17, %s703_s17   ;;  %s525_s16 = sphi %s564_s16, %s702_s16   ;;  %s521_s15 = sphi %s562_s15, %s701_s15  }
   0x6   : > { %s587_s21 = sadd.s32 1, %s533_s18   ;;  %s96_s22 = sadd.s32 1, %s529_s17 }
   0x7   : > { %s93_s23 = ssub.s32 %s533_s18, %s587_s21  ;;  %p106_p0 = scmp.ne.s32.totalorder %s529_s17, %s525_s16 }
   0x8   : > { %p94_p1 = scmp.eq.s32.totalorder %s93_s23, 0  ;;  %p107_p2 = scmp.eq.s32.totalorder %s583_s19, 1 }
   0x9   : > { %p112_p3 = scmp.ne.s32.totalorder %s525_s16, %s521_s15  ;;  %p113_p4 = scmp.eq.s32.totalorder %s382_s20, 1 }
   0xa   : > { %s598_s24 = scalar_select %p94_p1, %s529_s17, %s96_s22  }
   0xb   : > { %p600_p5 = por %p107_p2, %p106_p0  ;;  %p604_p6 = por %p113_p4, %p112_p3 }
   0xc   : > { %p385_p7 = scmp.ge.s32.totalorder %s533_s18, 1  ;;  %p171_p8 = scmp.lt.s32.totalorder %s533_s18, 3 }
   0xe   : > { %p172_p9 = pnand %p385_p7, %p171_p8 }
   0xf   : > { %p200_p10 = scmp.lt.s32.totalorder (!%p172_p9), %s583_s19, 1  ;;  %s616_s6 = sand.u32 (!%p172_p9), 1, %s525_s16  }
  0x10   : > { %175 = sbr.rel (%p172_p9) target bundleno = 376 (0x178), region = 32  ;;  %s390_s11 = sshll.u32 (!%p172_p9), %s583_s19, 4 }
  0x11   : > { %s193_s12 = scalar_lea.vmem (!%p172_p9), [#allocation2], %s616_s6  ;;  %s631_s22 = scalar_lea.hbm (!%p172_p9), %s697_s3, %s390_s11 }
  0x12   : > { %s286_s13 = sshll.u32 (!%p172_p9), %s193_s12, 4  ;;  %s270_s23 = scalar_lea.sflag (!%p172_p9), [#allocation3], %s616_s6  ;;  %s633_s13 = int_to_ptr.vmem [resolvable:$true] %s286_s13 }
  0x15   : > { %s201_s27 = scalar_select %p200_p10, %s583_s19, 1  ;;  %v249_v16 = vlaneseq  ;;  %v388_v18 = vld [vmem:[%s695_s1] ss:$0 sm:$0xff] }
  0x16   : > { %v389_v20 = vld [vmem:[%s696_s2] ss:$0 sm:$0xff] }
  0x17   : > { %s394_s28 = sshll.u32 %s201_s27, 4  ;;  %v250_v21 = vshrl.u32 %v249_v16, 7  ;;  %s443_s27 = scalar_lea.vmem %s633_s13, 16 }
  0x18   : > { %s204_s5 = scalar_lea.vmem %s694_s0, %s394_s28  ;;  %p444_p11 = scmp.ne.s32.totalorder %s633_s13, %s443_s27 }
  0x19   : > { %v205_v0 = vld [vmem:[%s204_s5] sm:$0xff]  ;;  %v206_v1 = vld [vmem:[%s204_s5 + $0x8] sm:$0xff]  ;;  %v251_v24 = vadd.s32 8, %v250_v21  ;;  %vm252_vm0 = vcmp.ge.s32.totalorder %v250_v21, 5  ;;  %s535_s28 = smov [#allocation2]  }
  0x1a   : > { %209 = vadd.xlane.f32.xlu0 %v205_v0  ;;  %p445_p12 = pnand %p444_p11, %p600_p5  ;;  %s447_s29 = sshll.u32 %s535_s28, 4  ;;  %s448_s29 = int_to_ptr.vmem [resolvable:$false] %s447_s29 }
  0x1b   : > { %vm255_vm1 = vcmp.lt.s32.totalorder %v251_v24, 9  ;;  %s449_s30 = scalar_lea.vmem %s448_s29, 32  ;;  %p450_p0 = scmp.lt.s32.totalorder %s633_s13, %s448_s29 }
  0x1c   : > { %p446_p13 = pneg %p445_p12  ;;  %p451_p1 = scmp.lt.s32.totalorder %s449_s30, %s443_s27 }
  0x1e   : > { %211 = vadd.xlane.f32.xlu0 %v206_v1  ;;  %p452_p2 = por %p451_p1, %p450_p0 }
  0x20   : > { %p453_p3 = pnand %p452_p2, %p446_p13 }
  0xa3   : > { %v210_v2 = vpop.xlane.xlu0 %209 }
  0xa4   : > { %v214_v3 = vmul.f32 0.0078125, %v210_v2 }
  0xa6   : > { %v216_v4 = vsub.f32 %v205_v0, %v214_v3 }
  0xa7   : > { %v212_v5 = vpop.xlane.xlu0 %211 }
  0xa8   : > { %v215_v6 = vmul.f32 0.0078125, %v212_v5  ;;  %v218_v7 = vmul.f32 %v216_v4, %v216_v4 }
  0xaa   : > { %v217_v8 = vsub.f32 %v206_v1, %v215_v6  ;;  %220 = vadd.xlane.f32.xlu1 %v218_v7 }
  0xac   : > { %v219_v9 = vmul.f32 %v217_v8, %v217_v8 }
  0xae   : > { %222 = vadd.xlane.f32.xlu1 %v219_v9 }
 0x133   : > { %v221_v10 = vpop.xlane.xlu1 %220 }
 0x134   : > { %v224_v11 = vmul.f32 0.0078125, %v221_v10 }
 0x136   : > { %v226_v12 = vadd.f32 1e-06, %v224_v11 }
 0x137   : > { %v223_v13 = vpop.xlane.xlu1 %222 }
 0x138   : > { %439 = vrsqrt.f32 %v226_v12  ;;  %v225_v14 = vmul.f32 0.0078125, %v223_v13 }
 0x13a   : > { %v227_v15 = vadd.f32 1e-06, %v225_v14 }
 0x13c   : > { %441 = vrsqrt.f32 %v227_v15 }
 0x145   : > { %v440_v17 = vpop.eup %439 }
 0x146   : > { %v230_v19 = vmul.f32 %v440_v17, %v216_v4 }
 0x148   : > { %v238_v22 = vmul.f32 %v388_v18, %v230_v19 }
 0x149   : > { %v442_v23 = vpop.eup %441 }
 0x14a   : > { %v231_v25 = vmul.f32 %v442_v23, %v217_v8  ;;  %v246_v26 = vadd.f32 %v389_v20, %v238_v22 }
 0x14c   : > { %v239_v27 = vmul.f32 %v388_v18, %v231_v25  ;;  %248 = vst [vmem:[%s193_s12] sm:$0x1] %v246_v26 }
 0x14d   : > { %456 = shalt.err (!%p453_p3)
}
 0x14e   : > { %s457_s5 = scalar_lea.hbm %s631_s22, 16  ;;  %s461_s9 = scalar_lea.hbm %s697_s3, 32 }
 0x14f   : > { %p458_p4 = scmp.ne.s32.totalorder %s631_s22, %s457_s5  ;;  %p462_p9 = scmp.lt.s32.totalorder %s631_s22, %s697_s3 }
 0x150   : > { %p463_p10 = scmp.lt.s32.totalorder %s461_s9, %s457_s5 }
 0x151   : > { %p459_p7 = pnand %p458_p4, %p600_p5 }
 0x152   : > { %p464_p11 = por %p463_p10, %p462_p9 }
 0x153   : > { %p460_p8 = pneg %p459_p7 }
 0x155   : > { %p465_p12 = pnand %p464_p11, %p460_p8 }
 0x157   : > { %468 = shalt.err (!%p465_p12)
}
 0x158   : > { %395 = dma.vmem_to_hbm [thread:$0]  (%p600_p5), %s633_s13, 16, %s631_s22, %s270_s23   ;;  %v247_v28 = vadd.f32 %v389_v20, %v239_v27  ;;  %v258_v29 = vsel %vm252_vm0, %v246_v26, 0.0 }
 0x159   : > { %s199_s14 = scalar_lea.vmem [#allocation4], %s616_s6  ;;  %s297_s22 = scalar_lea.hbm %s698_s4, %s390_s11 }
 0x15a   : > { %v259_v30 = vsel %vm255_vm1, %v247_v28, 0.0  ;;  %s299_s20 = sshll.u32 %s199_s14, 4  ;;  %s274_s23 = scalar_lea.sflag [#allocation5], %s616_s6  ;;  %s300_s20 = int_to_ptr.vmem [resolvable:$true] %s299_s20 }
 0x15b   : > { %v260_v31 = vadd.f32 %v259_v30, %v258_v29  ;;  %s469_s28 = scalar_lea.vmem %s300_s20, 16  ;;  %s536_s29 = smov [#allocation4]  }
 0x15c   : > { %p470_p13 = scmp.ne.s32.totalorder %s300_s20, %s469_s28  ;;  %s473_s30 = sshll.u32 %s536_s29, 4  ;;  %s474_s30 = int_to_ptr.vmem [resolvable:$false] %s473_s30 }
 0x15d   : > { %v261_v32 = vrot.slane %v260_v31, 4  ;;  %s475_s5 = scalar_lea.vmem %s474_s30, 32  ;;  %p476_p2 = scmp.lt.s32.totalorder %s300_s20, %s474_s30 }
 0x15e   : > { %p471_p0 = pnand %p470_p13, %p600_p5  ;;  %p477_p3 = scmp.lt.s32.totalorder %s475_s5, %s469_s28 }
 0x15f   : > { %v262_v33 = vadd.f32 %v261_v32, %v260_v31 }
 0x160   : > { %p472_p1 = pneg %p471_p0  ;;  %p478_p4 = por %p477_p3, %p476_p2 }
 0x161   : > { %v263_v34 = vrot.slane %v262_v33, 2 }
 0x162   : > { %p479_p7 = pnand %p478_p4, %p472_p1 }
 0x163   : > { %v264_v35 = vadd.f32 %v263_v34, %v262_v33 }
 0x165   : > { %v265_v36 = vrot.slane %v264_v35, 1 }
 0x167   : > { %v266_v37 = vadd.f32 %v265_v36, %v264_v35 }
 0x169   : > { %v267_v38 = vmul.f32 0.25, %v266_v37 }
 0x16b   : > { %268 = vst [vmem:[%s199_s14] sm:$0x1] %v267_v38 }
 0x16c   : > { %482 = shalt.err (!%p479_p7)
}
 0x16d   : > { %s483_s19 = scalar_lea.hbm %s297_s22, 16  ;;  %s487_s7 = scalar_lea.hbm %s698_s4, 32 }
 0x16e   : > { %p484_p8 = scmp.ne.s32.totalorder %s297_s22, %s483_s19  ;;  %p488_p11 = scmp.lt.s32.totalorder %s297_s22, %s698_s4 }
 0x16f   : > { %p489_p12 = scmp.lt.s32.totalorder %s487_s7, %s483_s19 }
 0x170   : > { %p485_p9 = pnand %p484_p8, %p600_p5 }
 0x171   : > { %p490_p13 = por %p489_p12, %p488_p11 }
 0x172   : > { %p486_p10 = pneg %p485_p9 }
 0x174   : > { %p491_p0 = pnand %p490_p13, %p486_p10 }
 0x176   : > { %494 = shalt.err (!%p491_p0)
}
 0x177   : > { %396 = dma.vmem_to_hbm [thread:$0]  (%p600_p5), %s300_s20, 16, %s297_s22, %s274_s23  }
 0x178 PF: > { %p406_p1 = scmp.ge.s32.totalorder %s533_s18, 2  ;;  %s311_s10 = sand.u32 1, %s521_s15  }
 0x179   : > { %s312_s12 = scalar_lea.sflag [#allocation3], %s311_s10 }
 0x17a   : > { %p400_p2 = pnand %p406_p1, %p604_p6 }
 0x17c   : > { %p401_p3 = pneg %p400_p2 }
 0x17e   : > { %512 = dma.done.wait (%p401_p3), %s312_s12, 16  }
 0x17f   : > { %514 = vsyncadd (%p401_p3), %s312_s12, 4294967280  ;;  %s320_s14 = scalar_lea.sflag [#allocation5], %s311_s10 }
 0x180   : > { %516 = dma.done.wait (%p401_p3), %s320_s14, 16  }
 0x181   : > { %518 = vsyncadd (%p401_p3), %s320_s14, 4294967280  ;;  %p18_p5 = scmp.ge.s32.totalorder %s587_s21, 4   ;;  %s701_s15 = smov %s525_s16 }
 0x182   : > { %s702_s16 = smov %s529_s17  ;;  %s703_s17 = smov %s598_s24 }
 0x183   : > { %s704_s18 = smov %s587_s21  ;;  %20 = sbr.rel (!%p18_p5) target bundleno = 5 (0x5), region = 84 }
 0x188   :  { %324 = vsyncpa [#allocation3], 1 }
 0x189   :  { %326 = vsyncpa [#allocation3 + $0x1], 1 }
 0x18a   :  { %327 = vsyncpa [#allocation5], 1 }
 0x18b   :  { %329 = vsyncpa [#allocation5 + $0x1], 1 }

// kernel: virchow2_forward.4
= control target key start
LH: loop header
LB: loop body
LE: loop exit
PB: predicated region body
PF: predicated region fallthrough
CT: control target
= control target key end

     0   :  { %s534_s18 = smov 0   ;;  %s600_s0 = inlined_call_operand.vmem [shape: f32[2,4,192], index: 0, kind: input, shape index: {}]   ;;  %s601_s1 = inlined_call_operand.vmem [shape: bf16[192,128], index: 1, kind: input, shape index: {}]   ;;  %s602_s2 = inlined_call_operand.vmem [shape: f32[1,128], index: 2, kind: input, shape index: {}]   ;;  %s603_s3 = inlined_call_operand.vmem [shape: f32[5,128], index: 3, kind: input, shape index: {}]   ;;  %s604_s4 = inlined_call_operand.vmem [shape: f32[4,128], index: 4, kind: input, shape index: {}]   ;;  %s605_s5 = inlined_call_operand.vmem [shape: f32[2,16,128], index: 5, kind: output, shape index: {}]  }
   0x1 LB: > { %s446_s19 = sadd.s32 4294967295, %s501_s18   ;;  %p450_p0 = scmp.ge.s32.totalorder %s501_s18, 1  ;;  %s501_s18 = sphi %s534_s18, %s15_s18  }
   0x2   : > { %p187_p1 = scmp.lt.s32.totalorder %s501_s18, 3 }
   0x4   : > { %p188_p2 = pnand %p450_p0, %p187_p1 }
   0x5   : > { %p215_p3 = scmp.lt.s32.totalorder (!%p188_p2), %s446_s19, 1 }
   0x6   : > { %191 = sbr.rel (%p188_p2) target bundleno = 261 (0x105), region = 40 }
   0xb   : > { %v482_v0 = vld [vmem:[%s601_s1 + $0x38] sm:$0xff]   ;;  %v503_v1 = vmov 0   ;;  %v483_v2 = vld [vmem:[%s601_s1 + $0x30] sm:$0xff]   ;;  %s607_s19 = smov (!%p215_p3, %s446_s19), 1  ;;  %v484_v3 = vld [vmem:[%s601_s1 + $0x28] sm:$0xff]   ;;  %vm335_vm0 = vcmask 523264  }
   0xc   : > { %339 = vmatprep.subr.bf16.mxu0 %v503_v1  ;;  %s471_s26 = sshll.u32 %s607_s19, 3  ;;  %v485_v4 = vld [vmem:[%s601_s1 + $0x20] sm:$0xff]   ;;  %v486_v7 = vld [vmem:[%s601_s1 + $0x18] sm:$0xff]   ;;  %v487_v9 = vld [vmem:[%s601_s1 + $0x10] sm:$0xff]   ;;  %vm385_vm1 = vcmask 1044480   ;;  %vm387_vm2 = vcmask 1040384  }
   0xd   : > { %340 = vmatpush1.bf16.msra.mxu0 %v482_v0  ;;  %s219_s29 = scalar_lea.vmem %s600_s0, %s471_s26  ;;  %v488_v10 = vld [vmem:[%s601_s1 + $0x8] sm:$0xff]   ;;  %v489_v11 = vld [vmem:[%s601_s1] sm:$0xff]   ;;  %v490_v12 = vld [vmem:[%s601_s1 + $0x58] sm:$0xff]  }
   0xe   : > { %341 = vmatprep.subr.bf16.mxu0 %v503_v1  ;;  %v226_v5 = vld [vmem:[%s219_s29] sm:$0xff]  ;;  %v491_v13 = vld [vmem:[%s601_s1 + $0x50] sm:$0xff]   ;;  %v492_v14 = vld [vmem:[%s601_s1 + $0x48] sm:$0xff]   ;;  %s472_s29 = sshll.u32 %s607_s19, 4 }
   0xf   : > { %v228_v6 = vcombine.high %v226_v5, %v226_v5  ;;  %v493_v15 = vld [vmem:[%s601_s1 + $0x40] sm:$0xff]   ;;  %v230_v16 = vpack.c.bf16 %v226_v5, %v226_v5  ;;  %s224_s9 = scalar_lea.vmem %s605_s5, %s472_s29 }
  0x10   : > { %v455_v17 = vld [vmem:[%s602_s2] ss:$0 sm:$0xff] }
  0x11   : > { %342 = vmatpush1.bf16.msra.mxu0 %v483_v2  ;;  %v231_v8 = vpack.c.bf16 %v228_v6, %v228_v6  ;;  %v380_v19 = vld [vmem:[%s604_s4] sm:$0xf] }
  0x12   : > { %343 = vmatprep.subr.bf16.mxu0 %v503_v1  ;;  %v379_v23 = vld [vmem:[%s603_s3] sm:$0x1f] }
  0x13   : > { %468 = vmatprep.mubr.msk.bf16.mxu0 %vm335_vm0, %v231_v8 }
  0x15   : > { %344 = vmatpush1.bf16.msra.mxu0 %v484_v3 }
  0x16   : > { %345 = vmatprep.subr.bf16.mxu0 %v503_v1 }
  0x19   : > { %346 = vmatpush1.bf16.msra.mxu0 %v485_v4 }
  0x1a   : > { %347 = vmatprep.subr.bf16.mxu0 %v503_v1 }
  0x1d   : > { %348 = vmatpush1.bf16.msra.mxu0 %v486_v7 }
  0x1e   : > { %349 = vmatprep.subr.bf16.mxu0 %v503_v1 }
  0x21   : > { %350 = vmatpush1.bf16.msra.mxu0 %v487_v9 }
  0x22   : > { %351 = vmatprep.subr.bf16.mxu0 %v503_v1 }
  0x25   : > { %352 = vmatpush1.bf16.msra.mxu0 %v488_v10 }
  0x26   : > { %353 = vmatprep.subr.bf16.mxu0 %v503_v1 }
  0x29   : > { %354 = vmatpush1.bf16.msra.mxu0 %v489_v11 }
  0x2a   : > { %363 = vmatprep.subr.bf16.mxu0 %v503_v1 }
  0x2d   : > { %364 = vmatpush2.bf16.msra.mxu0 %v490_v12 }
  0x2e   : > { %365 = vmatprep.subr.bf16.mxu0 %v503_v1 }
  0x31   : > { %366 = vmatpush2.bf16.msra.mxu0 %v491_v13 }
  0x32   : > { %367 = vmatprep.subr.bf16.mxu0 %v503_v1 }
  0x35   : > { %368 = vmatpush2.bf16.msra.mxu0 %v492_v14 }
  0x36   : > { %369 = vmatprep.subr.bf16.mxu0 %v503_v1 }
  0x39   : > { %370 = vmatpush2.bf16.msra.mxu0 %v493_v15 }
  0x3c   : > { %372 = vmatmul.mubr.bf16.vlgmr.msra.gmra.mxu0 %v230_v16 }
  0xfc   : > { %v373_v18 = vpop.f32.mrf.mxu0 }
  0xfd   : > { %v374_v20 = vadd.f32 %v455_v17, %v373_v18 }
  0xfe   : > { %v375_v21 = vpop.f32.mrf.mxu0 }
  0xff   : > { %v381_v22 = vadd.f32 %v380_v19, %v374_v20 }
 0x100   : > { %v376_v24 = vpop.f32.mrf.mxu0 }
 0x101   : > { %v383_v25 = vrot.slane %v381_v22, 3 }
 0x102   : > { %v377_v26 = vpop.f32.mrf.mxu0 }
 0x103   : > { %v386_v27 = vsel %vm385_vm1, %v379_v23, %v383_v25  ;;  %v388_v28 = vsel %vm387_vm2, %v383_v25, 0.0 }
 0x104   : > { %389 = vst [vmem:[%s224_s9] sm:$0xff] %v386_v27  ;;  %390 = vst [vmem:[%s224_s9 + $0x8] sm:$0xff] %v388_v28 }
 0x105 PF: > { %s15_s18 = sadd.s32 1, %s501_s18  }
 0x106   : > { %p12_p4 = scmp.ge.s32.totalorder %s15_s18, 4  }
 0x108   :  { %14 = sbr.rel (!%p12_p4) target bundleno = 1 (0x1), region = 70 }

// kernel: virchow2_forward.5
= control target key start
LH: loop header
LB: loop body
LE: loop exit
PB: predicated region body
PF: predicated region fallthrough
CT: control target
= control target key end

     0   :  { %s2889_s25 = smov 0   ;;  %s3403_s0 = inlined_call_operand.vmem [shape: f32[2,16,128], index: 0, kind: input, shape index: {}]   ;;  %s3404_s1 = inlined_call_operand.vmem [shape: f32[1,128], index: 1, kind: input, shape index: {}]   ;;  %s3405_s2 = inlined_call_operand.vmem [shape: f32[1,128], index: 2, kind: input, shape index: {}]   ;;  %s3406_s3 = inlined_call_operand.vmem [shape: bf16[128,384], index: 3, kind: input, shape index: {}]   ;;  %s3407_s4 = inlined_call_operand.vmem [shape: f32[1,384], index: 4, kind: input, shape index: {}]   ;;  %s3408_s5 = inlined_call_operand.vmem [shape: bf16[128,128], index: 5, kind: input, shape index: {}]   ;;  %s3409_s6 = inlined_call_operand.vmem [shape: f32[1,128], index: 6, kind: input, shape index: {}]   ;;  %s3410_s7 = inlined_call_operand.vmem [shape: f32[1,128], index: 7, kind: input, shape index: {}]   ;;  %s3411_s8 = inlined_call_operand.vmem [shape: f32[1,128], index: 8, kind: input, shape index: {}]   ;;  %s3412_s9 = inlined_call_operand.vmem [shape: bf16[128,512], index: 9, kind: input, shape index: {}]   ;;  %s3413_s10 = inlined_call_operand.vmem [shape: f32[1,512], index: 10, kind: input, shape index: {}]   ;;  %s3414_s11 = inlined_call_operand.vmem [shape: bf16[256,128], index: 11, kind: input, shape index: {}]   ;;  %s3415_s12 = inlined_call_operand.vmem [shape: f32[1,128], index: 12, kind: input, shape index: {}]   ;;  %s3416_s13 = inlined_call_operand.vmem [shape: f32[2,16,128], index: 13, kind: output, shape index: {}]  }
   0x1 LB: > { %s2321_s26 = sadd.s32 4294967295, %s2811_s25   ;;  %p2325_p0 = scmp.ge.s32.totalorder %s2811_s25, 1  ;;  %s2811_s25 = sphi %s2889_s25, %s23_s25  }
   0x2   : > { %p387_p1 = scmp.lt.s32.totalorder %s2811_s25, 3 }
   0x4   : > { %p388_p2 = pnand %p2325_p0, %p387_p1 }
   0x5   : > { %p431_p3 = scmp.lt.s32.totalorder (!%p388_p2), %s2321_s26, 1  ;;  %s2816_s29 = smov (!%p388_p2), 96  }
   0x6   : > { %391 = sbr.rel (%p388_p2) target bundleno = 3479 (0xd97), region = 72  ;;  %s2818_s14 = smov (!%p388_p2), 32  }
   0xb   : > { %s3418_s26 = smov (!%p431_p3, %s2321_s26), 1  ;;  %v2645_v2 = vld [vmem:[%s3406_s3 + $0xac] ss:$12 sps:$4 sm:$0xff]   ;;  %v2647_v3 = vld [vmem:[%s3406_s3 + $0xa8] ss:$12 sps:$4 sm:$0xff]   ;;  %v2813_v4 = vmov 0.0   ;;  %v520_v53 = vlaneseq }
   0xc   : > { %s2446_s27 = sshll.u32 %s3418_s26, 4  ;;  %2520 = vmatprep.subr.bf16.mxu1 %v2813_v4  ;;  %v2648_v5 = vld [vmem:[%s3406_s3 + $0xb0] ss:$12 sps:$4 sm:$0xff]   ;;  %663 = vmatprep.subr.bf16.mxu0 %v2645_v2  ;;  %v2649_v14 = vld [vmem:[%s3406_s3 + $0x94] ss:$12 sps:$4 sm:$0xff]   ;;  %v2814_v27 = vmov 0  }
   0xd   : > { %s435_s30 = scalar_lea.vmem %s3403_s0, %s2446_s27  ;;  %664 = vmatpush1.bf16.msra.mxu0 %v2647_v3  ;;  %2521 = vmatpush3.bf16.msra.mxu1 %v2648_v5  ;;  %v2651_v15 = vld [vmem:[%s3406_s3 + $0x90] ss:$12 sps:$4 sm:$0xff]   ;;  %v2652_v16 = vld [vmem:[%s3406_s3 + $0x98] ss:$12 sps:$4 sm:$0xff]   ;;  %v2656_v19 = vld [vmem:[%s3406_s3 + $0x80] ss:$12 sps:$4 sm:$0xff]  }
   0xe   : > { %v2905_v0 = vld [vmem:[%s435_s30] sm:$0xff]  ;;  %v2907_v1 = vld [vmem:[%s435_s30 + $0x8] sm:$0xff]  ;;  %2522 = vmatprep.subr.bf16.mxu1 %v2813_v4  ;;  %665 = vmatprep.subr.bf16.mxu0 %v2649_v14  ;;  %v2664_v25 = vld [vmem:[%s3406_s3 + $0x50] ss:$12 sps:$4 sm:$0xff]   ;;  %vm2815_vm0 = vmmov 0   ;;  %v3012_v54 = vshrl.u32 %v520_v53, 7 }
   0xf   : > { %446 = vadd.xlane.f32.xlu0 %v2905_v0  ;;  %v2653_v17 = vld [vmem:[%s3406_s3 + $0x7c] ss:$12 sps:$4 sm:$0xff]   ;;  %v2655_v18 = vld [vmem:[%s3406_s3 + $0x78] ss:$12 sps:$4 sm:$0xff]   ;;  %v2659_v21 = vld [vmem:[%s3406_s3 + $0x60] ss:$12 sps:$4 sm:$0xff]   ;;  %695 = vmatprep.mubr.bf16.mxu0 %v2814_v27 }
  0x10   : > { %v2657_v20 = vld [vmem:[%s3406_s3 + $0x64] ss:$12 sps:$4 sm:$0xff]   ;;  %v2660_v22 = vld [vmem:[%s3406_s3 + $0x68] ss:$12 sps:$4 sm:$0xff]   ;;  %v2661_v23 = vld [vmem:[%s3406_s3 + $0x4c] ss:$12 sps:$4 sm:$0xff]   ;;  %2536 = vmatprep.mubr.msk.bf16.mxu1 %vm2815_vm0, %v2813_v4 }
  0x11   : > { %666 = vmatpush1.bf16.msra.mxu0 %v2651_v15  ;;  %2523 = vmatpush3.bf16.msra.mxu1 %v2652_v16  ;;  %v2663_v24 = vld [vmem:[%s3406_s3 + $0x48] ss:$12 sps:$4 sm:$0xff]   ;;  %v2667_v28 = vld [vmem:[%s3406_s3 + $0x30] ss:$12 sps:$4 sm:$0xff]   ;;  %v2668_v29 = vld [vmem:[%s3406_s3 + $0x38] ss:$12 sps:$4 sm:$0xff]  }
  0x12   : > { %2524 = vmatprep.subr.bf16.mxu1 %v2813_v4  ;;  %667 = vmatprep.subr.bf16.mxu0 %v2653_v17  ;;  %v2665_v26 = vld [vmem:[%s3406_s3 + $0x34] ss:$12 sps:$4 sm:$0xff]   ;;  %v2669_v30 = vld [vmem:[%s3406_s3 + $0x1c] ss:$12 sps:$4 sm:$0xff]   ;;  %v2671_v31 = vld [vmem:[%s3406_s3 + $0x18] ss:$12 sps:$4 sm:$0xff]  }
  0x13   : > { %448 = vadd.xlane.f32.xlu0 %v2907_v1  ;;  %v2672_v32 = vld [vmem:[%s3406_s3 + $0x20] ss:$12 sps:$4 sm:$0xff]   ;;  %v2673_v33 = vld [vmem:[%s3406_s3 + $0x4] ss:$12 sps:$4 sm:$0xff]   ;;  %v2676_v35 = vld [vmem:[%s3406_s3 + $0x8] ss:$12 sps:$4 sm:$0xff]  }
  0x14   : > { %v2675_v34 = vld [vmem:[%s3406_s3] ss:$12 sps:$4 sm:$0xff]   ;;  %v522_v55 = vsub.s32 0, %v3012_v54  ;;  %v526_v57 = vsub.s32 1, %v3012_v54  ;;  %v530_v59 = vsub.s32 2, %v3012_v54  ;;  %vm750_vm1 = vcmask 261120  }
  0x15   : > { %668 = vmatpush1.bf16.msra.mxu0 %v2655_v18  ;;  %2525 = vmatpush3.bf16.msra.mxu1 %v2656_v19  ;;  %v2330_v44 = vld [vmem:[%s3404_s1] ss:$0 sm:$0xff]  ;;  %v3068_v19 = vand.u32 127, %v520_v53  ;;  %vm842_vm3 = vcmask 130048   ;;  %s2817_s30 = smov 64   ;;  %vm1586_vm4 = vcmask 523264  }
  0x16   : > { %2526 = vmatprep.subr.bf16.mxu1 %v2813_v4  ;;  %669 = vmatprep.subr.bf16.mxu0 %v2657_v20  ;;  %v2331_v48 = vld [vmem:[%s3405_s2] ss:$0 sm:$0xff]  ;;  %vm1589_vm5 = vcmask 785408  }
  0x17   : > { %v518_v56 = vld [vmem:[%s3407_s4] sm:$0x7]  ;;  %vm749_vm2 = vcmp.lt.s32.totalorder %v3068_v19, 9 }
  0x18   : > { %v523_v58 = vrot.slane %v518_v56, %v522_v55  ;;  %v527_v60 = vrot.slane %v518_v56, %v526_v57  ;;  %v531_v5 = vrot.slane %v518_v56, %v530_v59 }
  0x19   : > { %670 = vmatpush1.bf16.msra.mxu0 %v2659_v21  ;;  %2527 = vmatpush3.bf16.msra.mxu1 %v2660_v22 }
  0x1a   : > { %671 = vmatprep.subr.bf16.mxu0 %v2661_v23  ;;  %2528 = vmatprep.subr.bf16.mxu1 %v2813_v4 }
  0x1d   : > { %672 = vmatpush1.bf16.msra.mxu0 %v2663_v24  ;;  %2529 = vmatpush3.bf16.msra.mxu1 %v2664_v25 }
  0x1e   : > { %673 = vmatprep.subr.bf16.mxu0 %v2665_v26  ;;  %2530 = vmatprep.subr.bf16.mxu1 %v2813_v4 }
  0x21   : > { %674 = vmatpush1.bf16.msra.mxu0 %v2667_v28  ;;  %2531 = vmatpush3.bf16.msra.mxu1 %v2668_v29 }
  0x22   : > { %675 = vmatprep.subr.bf16.mxu0 %v2669_v30  ;;  %2532 = vmatprep.subr.bf16.mxu1 %v2813_v4 }
  0x25   : > { %676 = vmatpush1.bf16.msra.mxu0 %v2671_v31  ;;  %2533 = vmatpush3.bf16.msra.mxu1 %v2672_v32 }
  0x26   : > { %677 = vmatprep.subr.bf16.mxu0 %v2673_v33  ;;  %2534 = vmatprep.subr.bf16.mxu1 %v2813_v4 }
  0x29   : > { %678 = vmatpush1.bf16.msra.mxu0 %v2675_v34  ;;  %2535 = vmatpush3.bf16.msra.mxu1 %v2676_v35 }
  0x98   : > { %v447_v6 = vpop.xlane.xlu0 %446 }
  0x99   : > { %v451_v7 = vmul.f32 0.0078125, %v447_v6 }
  0x9b   : > { %v2923_v8 = vsub.f32 %v2905_v0, %v451_v7 }
  0x9c   : > { %v449_v9 = vpop.xlane.xlu0 %448 }
  0x9d   : > { %v452_v10 = vmul.f32 0.0078125, %v449_v9  ;;  %v455_v11 = vmul.f32 %v2923_v8, %v2923_v8 }
  0x9f   : > { %v2928_v12 = vsub.f32 %v2907_v1, %v452_v10  ;;  %457 = vadd.xlane.f32.xlu1 %v455_v11 }
  0xa1   : > { %v456_v13 = vmul.f32 %v2928_v12, %v2928_v12 }
  0xa3   : > { %459 = vadd.xlane.f32.xlu1 %v456_v13 }
 0x128   : > { %v458_v36 = vpop.xlane.xlu1 %457 }
 0x129   : > { %v461_v37 = vmul.f32 0.0078125, %v458_v36 }
 0x12b   : > { %v463_v38 = vadd.f32 1e-06, %v461_v37 }
 0x12c   : > { %v460_v39 = vpop.xlane.xlu1 %459 }
 0x12d   : > { %2749 = vrsqrt.f32 %v463_v38  ;;  %v462_v40 = vmul.f32 0.0078125, %v460_v39 }
 0x12f   : > { %v464_v41 = vadd.f32 1e-06, %v462_v40 }
 0x131   : > { %2751 = vrsqrt.f32 %v464_v41 }
 0x13a   : > { %v2750_v42 = vpop.eup %2749 }
 0x13b   : > { %v467_v43 = vmul.f32 %v2750_v42, %v2923_v8 }
 0x13d   : > { %v475_v47 = vmul.f32 %v2330_v44, %v467_v43 }
 0x13e   : > { %v2752_v45 = vpop.eup %2751 }
 0x13f   : > { %v468_v46 = vmul.f32 %v2752_v45, %v2928_v12  ;;  %v483_v50 = vadd.f32 %v2331_v48, %v475_v47 }
 0x141   : > { %v476_v49 = vmul.f32 %v2330_v44, %v468_v46 }
 0x143   : > { %v484_v51 = vadd.f32 %v2331_v48, %v476_v49 }
 0x145   : > { %v485_v52 = vpack.c.bf16 %v484_v51, %v483_v50 }
 0x147   : > { %696 = vmatmul.mubr.bf16.vlgmr.msra.gmra.mxu0 %v485_v52  ;;  %2537 = vmatmul.mubr.bf16.vlgmr.msra.gmra.mxu1 %v485_v52 }
 0x207   : > { %v697_v61 = vpop.f32.mrf.mxu0  ;;  %v740_v62 = vpop.f32.mrf.mxu1 }
 0x208   : > { %v3024_v63 = vadd.f32 %v697_v61, %v523_v58  ;;  %v3036_v12 = vadd.f32 %v740_v62, %v531_v5 }
 0x209   : > { %v699_v2 = vpop.f32.mrf.mxu0  ;;  %v2538_v3 = vpop.f32.mrf.mxu1 }
 0x20a   : > { %v3028_v6 = vadd.f32 %v699_v2, %v527_v60  ;;  %2544 = vmatprep.mubr.msk.f32.mxu0 %vm750_vm1, %v3024_v63 }
 0x20b   : > { %v701_v7 = vpop.f32.mrf.mxu0  ;;  %v743_v8 = vpop.f32.mrf.mxu1 }
 0x20c   : > { %v3032_v9 = vadd.f32 %v743_v8, %v531_v5  ;;  %950 = vrot.lane.b32.xlu1 %v3028_v6, %s2816_s29  ;;  %v3052_v14 = vadd.f32 %v701_v7, %v523_v58 }
 0x20d   : > { %v703_v10 = vpop.f32.mrf.mxu0  ;;  %v2539_v11 = vpop.f32.mrf.mxu1 }
 0x20e   : > { %v3038_v13 = vadd.f32 %v703_v10, %v527_v60  ;;  %2547 = vmatprep.subr.mxu1 %v3032_v9 }
 0x20f   : > { %2548 = vmatpush3.msra.mxu1 %v3032_v9 }
 0x210   : > { %2549 = vmatprep.subr.mxu1 %v3036_v12  ;;  %952 = vrot.lane.b32.xlu0 %v3038_v13, %s2816_s29 }
 0x211   : > { %2540 = vmatprep.subr.msk.mxu0 %vm750_vm1, %v3038_v13  ;;  %946 = vrot.lane.b32.xlu1 %v3024_v63, %s2816_s29 }
 0x212   : > { %2541 = vmatpush3.xpose.msk.msra.mxu0 %vm750_vm1, %v3038_v13  ;;  %2550 = vmatpush3.msra.mxu1 %v3036_v12 }
 0x213   : > { %2542 = vmatprep.subr.msk.mxu0 %vm750_vm1, %v3028_v6 }
 0x215   : > { %948 = vrot.lane.b32.xlu1 %v3052_v14, %s2816_s29 }
 0x216   : > { %2543 = vmatpush3.xpose.msk.msra.mxu0 %vm750_vm1, %v3028_v6 }
 0x219   : > { %2545 = vmatmul.mubr.msk.f32.vlgmr.msra.gmra.mxu0 %vm750_vm1, %v3052_v14 }
 0x27e   : > { %v951_v15 = vpop.permute.xlu1 %950 }
 0x282   : > { %v953_v16 = vpop.permute.xlu0 %952 }
 0x283   : > { %v947_v17 = vpop.permute.xlu1 %946  ;;  %2554 = vmatprep.subr.msk.mxu0 %vm750_vm1, %v953_v16 }
 0x284   : > { %2558 = vmatprep.mubr.msk.f32.mxu0 %vm750_vm1, %v947_v17  ;;  %2555 = vmatpush3.xpose.msk.msra.mxu0 %vm750_vm1, %v953_v16 }
 0x285   : > { %2556 = vmatprep.subr.msk.mxu0 %vm750_vm1, %v951_v15 }
 0x287   : > { %v949_v18 = vpop.permute.xlu1 %948 }
 0x288   : > { %2557 = vmatpush3.xpose.msk.msra.mxu0 %vm750_vm1, %v951_v15 }
 0x28b   : > { %2559 = vmatmul.mubr.msk.f32.vlgmr.msra.gmra.mxu0 %vm750_vm1, %v949_v18 }
 0x2d9   : > { %v2546_v20 = vpop.f32.mrf.mxu0 }
 0x2da   : > { %v839_v21 = vmul.f32 0.17677669, %v2546_v20 }
 0x2db   : > { %v829_v22 = vpop.f32.mrf.mxu0 }
 0x2dc   : > { %v838_v23 = vmul.f32 0.17677669, %v829_v22  ;;  %v841_v24 = vsel %vm749_vm2, %v839_v21, -1e+30 }
 0x2dd   : > { %v846_v25 = vsel %vm842_vm3, %v841_v24, -inf }
 0x2de   : > { %847 = vmax.xlane.f32.xlu1 %v846_v25  ;;  %v840_v26 = vsel %vm749_vm2, %v838_v23, -1e+30 }
 0x2df   : > { %v843_v28 = vsel %vm842_vm3, %v840_v26, -inf }
 0x2e0   : > { %844 = vmax.xlane.f32.xlu0 %v843_v28 }
 0x34b   : > { %v2560_v29 = vpop.f32.mrf.mxu0 }
 0x34c   : > { %v1038_v31 = vmul.f32 0.17677669, %v2560_v29 }
 0x34d   : > { %v1028_v30 = vpop.f32.mrf.mxu0 }
 0x34e   : > { %v1037_v32 = vmul.f32 0.17677669, %v1028_v30  ;;  %v1040_v35 = vsel %vm749_vm2, %v1038_v31, -1e+30 }
 0x34f   : > { %v1044_v36 = vsel %vm842_vm3, %v1040_v35, -inf }
 0x350   : > { %v1039_v33 = vsel %vm749_vm2, %v1037_v32, -1e+30 }
 0x351   : > { %v1041_v34 = vsel %vm842_vm3, %v1039_v33, -inf }
 0x352   : > { %1042 = vmax.xlane.f32.xlu0 %v1041_v34 }
 0x356   : > { %1045 = vmax.xlane.f32.xlu0 %v1044_v36 }
 0x367   : > { %v848_v37 = vpop.xlane.xlu1 %847 }
 0x368   : > { %v850_v38 = vsub.f32 %v841_v24, %v848_v37 }
 0x369   : > { %v845_v39 = vpop.xlane.xlu0 %844 }
 0x36a   : > { %v853_v40 = vmul.f32 1.442695, %v850_v38  ;;  %v849_v41 = vsub.f32 %v840_v26, %v845_v39 }
 0x36c   : > { %2753 = vpow2.f32 %v853_v40  ;;  %v851_v42 = vmul.f32 1.442695, %v849_v41 }
 0x36e   : > { %2755 = vpow2.f32 %v851_v42 }
 0x379   : > { %v2754_v43 = vpop.eup %2753 }
 0x37a   : > { %v858_v44 = vsel %vm842_vm3, %v2754_v43, 0.0 }
 0x37b   : > { %v2756_v45 = vpop.eup %2755  ;;  %859 = vadd.xlane.f32.xlu1 %v858_v44 }
 0x37c   : > { %v855_v46 = vsel %vm842_vm3, %v2756_v45, 0.0 }
 0x37d   : > { %856 = vadd.xlane.f32.xlu0 %v855_v46 }
 0x3db   : > { %v1043_v47 = vpop.xlane.xlu0 %1042 }
 0x3dc   : > { %v1047_v48 = vsub.f32 %v1039_v33, %v1043_v47 }
 0x3de   : > { %v1049_v49 = vmul.f32 1.442695, %v1047_v48 }
 0x3df   : > { %v1046_v50 = vpop.xlane.xlu0 %1045 }
 0x3e0   : > { %2757 = vpow2.f32 %v1049_v49  ;;  %v1048_v51 = vsub.f32 %v1040_v35, %v1046_v50 }
 0x3e2   : > { %v1051_v52 = vmul.f32 1.442695, %v1048_v51 }
 0x3e4   : > { %2759 = vpow2.f32 %v1051_v52 }
 0x3ed   : > { %v2758_v53 = vpop.eup %2757 }
 0x3ee   : > { %v1053_v56 = vsel %vm842_vm3, %v2758_v53, 0.0 }
 0x3ef   : > { %1054 = vadd.xlane.f32.xlu0 %v1053_v56 }
 0x3f1   : > { %v2760_v58 = vpop.eup %2759 }
 0x3f2   : > { %v1056_v60 = vsel %vm842_vm3, %v2760_v58, 0.0 }
 0x3f3   : > { %1057 = vadd.xlane.f32.xlu1 %v1056_v60 }
 0x404   : > { %v860_v61 = vpop.xlane.xlu1 %859  ;;  %1065 = vrot.lane.b32.xlu1 %v3036_v12, %s2816_s29 }
 0x405   : > { %1067 = vrot.lane.b32.xlu0 %v3032_v9, %s2816_s29  ;;  %2761 = vrcp.f32 %v860_v61 }
 0x406   : > { %v857_v62 = vpop.xlane.xlu0 %856 }
 0x407   : > { %2763 = vrcp.f32 %v857_v62 }
 0x408   : > { %1158 = vrot.lane.b32.xlu1 %v3038_v13, %s2817_s30 }
 0x409   : > { %1152 = vrot.lane.b32.xlu0 %v3024_v63, %s2817_s30 }
 0x40c   : > { %1156 = vrot.lane.b32.xlu1 %v3028_v6, %s2817_s30 }
 0x410   : > { %1154 = vrot.lane.b32.xlu1 %v3052_v14, %s2817_s30 }
 0x412   : > { %v2762_v2 = vpop.eup %2761 }
 0x413   : > { %v864_v7 = vmul.f32 %v2762_v2, %v2754_v43 }
 0x414   : > { %v2764_v3 = vpop.eup %2763 }
 0x415   : > { %v863_v5 = vmul.f32 %v2764_v3, %v2756_v45 }
 0x417   : > { %2551 = vmatprep.mubr.msk.f32.mxu1 %vm842_vm3, %v863_v5 }
 0x418   : > { %2552 = vmatmul.mubr.msk.f32.vlgmr.msra.gmra.mxu1 %vm842_vm3, %v864_v7 }
 0x478   : > { %v1055_v8 = vpop.xlane.xlu0 %1054 }
 0x479   : > { %2765 = vrcp.f32 %v1055_v8 }
 0x47c   : > { %v1058_v10 = vpop.xlane.xlu1 %1057  ;;  %v1068_v11 = vpop.permute.xlu0 %1067 }
 0x47d   : > { %2767 = vrcp.f32 %v1058_v10  ;;  %2561 = vmatprep.subr.mxu1 %v1068_v11 }
 0x47e   : > { %2562 = vmatpush3.msra.mxu1 %v1068_v11 }
 0x480   : > { %v1066_v15 = vpop.permute.xlu1 %1065  ;;  %v1153_v22 = vpop.permute.xlu0 %1152 }
 0x481   : > { %2563 = vmatprep.subr.mxu1 %v1066_v15 }
 0x482   : > { %2564 = vmatpush3.msra.mxu1 %v1066_v15 }
 0x484   : > { %v1159_v16 = vpop.permute.xlu1 %1158 }
 0x485   : > { %2568 = vmatprep.subr.msk.mxu1 %vm750_vm1, %v1159_v16 }
 0x486   : > { %v2766_v17 = vpop.eup %2765 }
 0x487   : > { %v1061_v18 = vmul.f32 %v2766_v17, %v2758_v53 }
 0x488   : > { %v1157_v23 = vpop.permute.xlu1 %1156 }
 0x489   : > { %2565 = vmatprep.mubr.msk.f32.mxu1 %vm842_vm3, %v1061_v18 }
 0x48a   : > { %v2768_v20 = vpop.eup %2767 }
 0x48b   : > { %v1062_v21 = vmul.f32 %v2768_v20, %v2760_v58 }
 0x48c   : > { %v1155_v24 = vpop.permute.xlu1 %1154 }
 0x48d   : > { %2566 = vmatmul.mubr.msk.f32.vlgmr.msra.gmra.mxu1 %vm842_vm3, %v1062_v21 }
 0x48e   : > { %2569 = vmatpush3.xpose.msk.msra.mxu1 %vm750_vm1, %v1159_v16  ;;  %2572 = vmatprep.mubr.msk.f32.mxu1 %vm750_vm1, %v1153_v22 }
 0x48f   : > { %2570 = vmatprep.subr.msk.mxu1 %vm750_vm1, %v1157_v23 }
 0x492   : > { %2571 = vmatpush3.xpose.msk.msra.mxu1 %vm750_vm1, %v1157_v23 }
 0x495   : > { %2573 = vmatmul.mubr.msk.f32.vlgmr.msra.gmra.mxu1 %vm750_vm1, %v1155_v24 }
 0x4d8   : > { %v3109_v25 = vpop.f32.mrf.mxu1 }
 0x4da   : > { %v3111_v26 = vpop.f32.mrf.mxu1 }
 0x54d   : > { %v3113_v28 = vpop.f32.mrf.mxu1 }
 0x54f   : > { %v3115_v29 = vpop.f32.mrf.mxu1 }
 0x550   : > { %v2630_v30 = vpack.i.bf16 %v3113_v28, %v3115_v29 }
 0x555   : > { %v2574_v31 = vpop.f32.mrf.mxu1 }
 0x556   : > { %v1244_v32 = vmul.f32 0.17677669, %v2574_v31 }
 0x557   : > { %v1234_v33 = vpop.f32.mrf.mxu1 }
 0x558   : > { %v1243_v34 = vmul.f32 0.17677669, %v1234_v33  ;;  %v1246_v35 = vsel %vm749_vm2, %v1244_v32, -1e+30 }
 0x559   : > { %v1250_v36 = vsel %vm842_vm3, %v1246_v35, -inf }
 0x55a   : > { %1251 = vmax.xlane.f32.xlu1 %v1250_v36  ;;  %v1245_v37 = vsel %vm749_vm2, %v1243_v34, -1e+30 }
 0x55b   : > { %v1247_v38 = vsel %vm842_vm3, %v1245_v37, -inf }
 0x55c   : > { %1248 = vmax.xlane.f32.xlu0 %v1247_v38  ;;  %v2679_v38 = vld [vmem:[%s3408_s5 + $0x28] sm:$0xff]  }
 0x56b   : > { %1269 = vrot.lane.b32.xlu1 %v3036_v12, %s2817_s30 }
 0x56f   : > { %1362 = vrot.lane.b32.xlu1 %v3038_v13, %s2818_s14 }
 0x573   : > { %1360 = vrot.lane.b32.xlu1 %v3028_v6, %s2818_s14 }
 0x577   : > { %1358 = vrot.lane.b32.xlu1 %v3052_v14, %s2818_s14 }
 0x5e3   : > { %v1252_v39 = vpop.xlane.xlu1 %1251 }
 0x5e4   : > { %v1254_v40 = vsub.f32 %v1246_v35, %v1252_v39  ;;  %v2680_v39 = vld [vmem:[%s3408_s5 + $0x20] sm:$0xff]  }
 0x5e5   : > { %v1249_v41 = vpop.xlane.xlu0 %1248 }
 0x5e6   : > { %v1257_v42 = vmul.f32 1.442695, %v1254_v40  ;;  %v1253_v43 = vsub.f32 %v1245_v37, %v1249_v41  ;;  %v2678_v37 = vld [vmem:[%s3408_s5 + $0x30] sm:$0xff]   ;;  %v2681_v40 = vld [vmem:[%s3408_s5 + $0x18] sm:$0xff]  }
 0x5e7   : > { %v1270_v48 = vpop.permute.xlu1 %1269  ;;  %v2682_v41 = vld [vmem:[%s3408_s5 + $0x10] sm:$0xff]  }
 0x5e8   : > { %2769 = vpow2.f32 %v1257_v42  ;;  %v1255_v44 = vmul.f32 1.442695, %v1253_v43  ;;  %v2683_v42 = vld [vmem:[%s3408_s5 + $0x8] sm:$0xff]   ;;  %v2684_v43 = vld [vmem:[%s3408_s5] sm:$0xff]  }
 0x5ea   : > { %2771 = vpow2.f32 %v1255_v44 }
 0x5eb   : > { %v1363_v50 = vpop.permute.xlu1 %1362 }
 0x5ef   : > { %v1361_v58 = vpop.permute.xlu1 %1360 }
 0x5f3   : > { %v1359_v60 = vpop.permute.xlu1 %1358 }
 0x5f5   : > { %v2770_v45 = vpop.eup %2769 }
 0x5f6   : > { %v1262_v46 = vsel %vm842_vm3, %v2770_v45, 0.0 }
 0x5f7   : > { %v2772_v47 = vpop.eup %2771  ;;  %1263 = vadd.xlane.f32.xlu0 %v1262_v46 }
 0x5f8   : > { %v1259_v13 = vsel %vm842_vm3, %v2772_v47, 0.0 }
 0x5fb   : > { %1260 = vadd.xlane.f32.xlu0 %v1259_v13 }
 0x611   : > { %1271 = vrot.lane.b32.xlu0 %v3032_v9, %s2817_s30 }
 0x615   : > { %1356 = vrot.lane.b32.xlu0 %v3024_v63, %s2818_s14 }
 0x680   : > { %v1264_v6 = vpop.xlane.xlu0 %1263 }
 0x681   : > { %2773 = vrcp.f32 %v1264_v6 }
 0x684   : > { %v1261_v14 = vpop.xlane.xlu0 %1260 }
 0x685   : > { %2775 = vrcp.f32 %v1261_v14 }
 0x688   : > { %v1272_v49 = vpop.permute.xlu0 %1271 }
 0x689   : > { %2575 = vmatprep.subr.mxu0 %v1272_v49 }
 0x68a   : > { %2576 = vmatpush3.msra.mxu0 %v1272_v49 }
 0x68b   : > { %2577 = vmatprep.subr.mxu0 %v1270_v48 }
 0x68c   : > { %2578 = vmatpush3.msra.mxu0 %v1270_v48  ;;  %v1357_v63 = vpop.permute.xlu0 %1356 }
 0x68d   : > { %2582 = vmatprep.subr.msk.mxu0 %vm750_vm1, %v1363_v50 }
 0x68e   : > { %v2774_v51 = vpop.eup %2773 }
 0x68f   : > { %v1268_v56 = vmul.f32 %v2774_v51, %v2770_v45 }
 0x692   : > { %v2776_v52 = vpop.eup %2775 }
 0x693   : > { %v1267_v53 = vmul.f32 %v2776_v52, %v2772_v47 }
 0x695   : > { %2579 = vmatprep.mubr.msk.f32.mxu0 %vm842_vm3, %v1267_v53 }
 0x696   : > { %2580 = vmatmul.mubr.msk.f32.vlgmr.msra.gmra.mxu0 %vm842_vm3, %v1268_v56 }
 0x697   : > { %2583 = vmatpush3.xpose.msk.msra.mxu0 %vm750_vm1, %v1363_v50  ;;  %2586 = vmatprep.mubr.msk.f32.mxu0 %vm750_vm1, %v1357_v63 }
 0x698   : > { %2584 = vmatprep.subr.msk.mxu0 %vm750_vm1, %v1361_v58 }
 0x69b   : > { %2585 = vmatpush3.xpose.msk.msra.mxu0 %vm750_vm1, %v1361_v58 }
 0x69e   : > { %2587 = vmatmul.mubr.msk.f32.vlgmr.msra.gmra.mxu0 %vm750_vm1, %v1359_v60 }
 0x69f   : > { %1996 = vmatprep.mubr.bf16.mxu0 %v2814_v27 }
 0x756   : > { %v2581_v61 = vpop.f32.mrf.mxu0 }
 0x758   : > { %v1347_v62 = vpop.f32.mrf.mxu0 }
 0x759   : > { %v2635_v16 = vpack.i.bf16 %v2581_v61, %v1347_v62 }
 0x75e   : > { %v2588_v2 = vpop.f32.mrf.mxu0 }
 0x75f   : > { %v1448_v3 = vmul.f32 0.17677669, %v2588_v2  ;;  %v2388_v2 = vld [vmem:[%s3409_s6] ss:$0 sm:$0xff] }
 0x760   : > { %v1438_v5 = vpop.f32.mrf.mxu0 }
 0x761   : > { %v1447_v7 = vmul.f32 0.17677669, %v1438_v5  ;;  %v1450_v8 = vsel %vm749_vm2, %v1448_v3, -1e+30 }
 0x762   : > { %v1454_v10 = vsel %vm842_vm3, %v1450_v8, -inf }
 0x763   : > { %1455 = vmax.xlane.f32.xlu1 %v1454_v10  ;;  %v1449_v11 = vsel %vm749_vm2, %v1447_v7, -1e+30 }
 0x764   : > { %v1451_v15 = vsel %vm842_vm3, %v1449_v11, -inf }
 0x765   : > { %1452 = vmax.xlane.f32.xlu0 %v1451_v15 }
 0x774   : > { %1473 = vrot.lane.b32.xlu1 %v3036_v12, %s2818_s14 }
 0x778   : > { %2631 = vrot.lane.b32.xlu1 %v2630_v30, %s2818_s14 }
 0x77c   : > { %2636 = vrot.lane.b32.xlu1 %v2635_v16, %s2817_s30 }
 0x7ec   : > { %v1456_v17 = vpop.xlane.xlu1 %1455 }
 0x7ed   : > { %v1458_v18 = vsub.f32 %v1450_v8, %v1456_v17 }
 0x7ee   : > { %v1453_v20 = vpop.xlane.xlu0 %1452 }
 0x7ef   : > { %v1461_v21 = vmul.f32 1.442695, %v1458_v18  ;;  %v1457_v19 = vsub.f32 %v1449_v11, %v1453_v20  ;;  %v2688_v11 = vld [vmem:[%s3412_s9 + $0xe8] ss:$16 sps:$4 sm:$0xff]  }
 0x7f0   : > { %v1474_v32 = vpop.permute.xlu1 %1473 }
 0x7f1   : > { %2777 = vpow2.f32 %v1461_v21  ;;  %v1459_v22 = vmul.f32 1.442695, %v1457_v19 }
 0x7f3   : > { %2779 = vpow2.f32 %v1459_v22 }
 0x7f4   : > { %v2632_v47 = vpop.permute.xlu1 %2631 }
 0x7f5   : > { %v2634_v6 = vunpack.i.h.bf16 %v2632_v47  ;;  %v2633_v14 = vunpack.i.l.bf16 %v2632_v47  ;;  %v2724_v47 = vld [vmem:[%s3412_s9 + $0x28] ss:$16 sps:$4 sm:$0xff]  }
 0x7f7   : > { %v1584_v51 = vsel %vm750_vm1, %v3111_v26, %v2633_v14  ;;  %v2727_v14 = vld [vmem:[%s3412_s9] ss:$16 sps:$4 sm:$0xff]  }
 0x7f8   : > { %v2637_v13 = vpop.permute.xlu1 %2636 }
 0x7f9   : > { %v2639_v48 = vunpack.i.h.bf16 %v2637_v13  ;;  %v2638_v49 = vunpack.i.l.bf16 %v2637_v13  ;;  %v2729_v13 = vld [vmem:[%s3412_s9 + $0x4] ss:$16 sps:$4 sm:$0xff]  }
 0x7fb   : > { %v1587_v56 = vsel %vm1586_vm4, %v1584_v51, %v2638_v49 }
 0x7fe   : > { %v2778_v23 = vpop.eup %2777 }
 0x7ff   : > { %v1466_v24 = vsel %vm842_vm3, %v2778_v23, 0.0 }
 0x800   : > { %v2780_v12 = vpop.eup %2779  ;;  %1467 = vadd.xlane.f32.xlu0 %v1466_v24  ;;  %v2696_v24 = vld [vmem:[%s3412_s9 + $0xcc] ss:$16 sps:$4 sm:$0xff]  }
 0x801   : > { %v1463_v31 = vsel %vm842_vm3, %v2780_v12, 0.0 }
 0x804   : > { %1464 = vadd.xlane.f32.xlu0 %v1463_v31  ;;  %v2694_v31 = vld [vmem:[%s3412_s9 + $0xc8] ss:$16 sps:$4 sm:$0xff]  }
 0x81a   : > { %1475 = vrot.lane.b32.xlu0 %v3032_v9, %s2818_s14  ;;  %v2677_v9 = vld [vmem:[%s3408_s5 + $0x38] sm:$0xff]   ;;  %s440_s14 = scalar_lea.vmem %s3416_s13, %s2446_s27 }
 0x889   : > { %v1468_v28 = vpop.xlane.xlu0 %1467 }
 0x88a   : > { %2781 = vrcp.f32 %v1468_v28  ;;  %v2699_v28 = vld [vmem:[%s3412_s9 + $0xa4] ss:$16 sps:$4 sm:$0xff]  }
 0x88d   : > { %v1465_v29 = vpop.xlane.xlu0 %1464 }
 0x88e   : > { %2783 = vrcp.f32 %v1465_v29  ;;  %v2702_v29 = vld [vmem:[%s3412_s9 + $0xac] ss:$16 sps:$4 sm:$0xff]  }
 0x891   : > { %v1476_v30 = vpop.permute.xlu0 %1475 }
 0x892   : > { %2589 = vmatprep.subr.mxu1 %v1476_v30 }
 0x893   : > { %2590 = vmatpush3.msra.mxu1 %v1476_v30  ;;  %v2697_v30 = vld [vmem:[%s3412_s9 + $0xa0] ss:$16 sps:$4 sm:$0xff]  }
 0x894   : > { %2591 = vmatprep.subr.mxu1 %v1474_v32 }
 0x895   : > { %2592 = vmatpush3.msra.mxu1 %v1474_v32  ;;  %v2700_v32 = vld [vmem:[%s3412_s9 + $0xa8] ss:$16 sps:$4 sm:$0xff]  }
 0x896   : > { %2596 = vmatprep.subr.bf16.mxu1 %v2813_v4 }
 0x897   : > { %v2782_v33 = vpop.eup %2781 }
 0x898   : > { %v1472_v36 = vmul.f32 %v2782_v33, %v2778_v23  ;;  %v2693_v23 = vld [vmem:[%s3412_s9 + $0xc4] ss:$16 sps:$4 sm:$0xff]   ;;  %v2703_v33 = vld [vmem:[%s3412_s9 + $0x80] ss:$16 sps:$4 sm:$0xff]  }
 0x89b   : > { %v2784_v34 = vpop.eup %2783 }
 0x89c   : > { %v1471_v35 = vmul.f32 %v2784_v34, %v2780_v12  ;;  %v2691_v12 = vld [vmem:[%s3412_s9 + $0xc0] ss:$16 sps:$4 sm:$0xff]   ;;  %v2705_v34 = vld [vmem:[%s3412_s9 + $0x84] ss:$16 sps:$4 sm:$0xff]  }
 0x89e   : > { %2593 = vmatprep.mubr.msk.f32.mxu1 %vm842_vm3, %v1471_v35  ;;  %v2706_v35 = vld [vmem:[%s3412_s9 + $0x88] ss:$16 sps:$4 sm:$0xff]  }
 0x89f   : > { %2594 = vmatmul.mubr.msk.f32.vlgmr.msra.gmra.mxu1 %vm842_vm3, %v1472_v36  ;;  %v2708_v36 = vld [vmem:[%s3412_s9 + $0x8c] ss:$16 sps:$4 sm:$0xff]  }
 0x8a0   : > { %2612 = vmatprep.mubr.msk.bf16.mxu1 %vm2815_vm0, %v2813_v4  ;;  %2597 = vmatpush3.bf16.msra.mxu1 %v2677_v9  ;;  %v2711_v9 = vld [vmem:[%s3412_s9 + $0x64] ss:$16 sps:$4 sm:$0xff]  }
 0x8a1   : > { %2598 = vmatprep.subr.bf16.mxu1 %v2813_v4 }
 0x8a4   : > { %2599 = vmatpush3.bf16.msra.mxu1 %v2678_v37  ;;  %v2714_v37 = vld [vmem:[%s3412_s9 + $0x6c] ss:$16 sps:$4 sm:$0xff]  }
 0x8a5   : > { %2600 = vmatprep.subr.bf16.mxu1 %v2813_v4 }
 0x8a8   : > { %2601 = vmatpush3.bf16.msra.mxu1 %v2679_v38  ;;  %v2709_v38 = vld [vmem:[%s3412_s9 + $0x60] ss:$16 sps:$4 sm:$0xff]  }
 0x8a9   : > { %2602 = vmatprep.subr.bf16.mxu1 %v2813_v4 }
 0x8ac   : > { %2603 = vmatpush3.bf16.msra.mxu1 %v2680_v39  ;;  %v2712_v39 = vld [vmem:[%s3412_s9 + $0x68] ss:$16 sps:$4 sm:$0xff]  }
 0x8ad   : > { %2604 = vmatprep.subr.bf16.mxu1 %v2813_v4 }
 0x8b0   : > { %2605 = vmatpush3.bf16.msra.mxu1 %v2681_v40  ;;  %v2717_v40 = vld [vmem:[%s3412_s9 + $0x44] ss:$16 sps:$4 sm:$0xff]  }
 0x8b1   : > { %2606 = vmatprep.subr.bf16.mxu1 %v2813_v4 }
 0x8b4   : > { %2607 = vmatpush3.bf16.msra.mxu1 %v2682_v41  ;;  %v2720_v41 = vld [vmem:[%s3412_s9 + $0x4c] ss:$16 sps:$4 sm:$0xff]  }
 0x8b5   : > { %2608 = vmatprep.subr.bf16.mxu1 %v2813_v4 }
 0x8b8   : > { %2609 = vmatpush3.bf16.msra.mxu1 %v2683_v42  ;;  %v2715_v42 = vld [vmem:[%s3412_s9 + $0x40] ss:$16 sps:$4 sm:$0xff]  }
 0x8b9   : > { %2610 = vmatprep.subr.bf16.mxu1 %v2813_v4  ;;  %v1585_v4 = vsel %vm750_vm1, %v3109_v25, %v2634_v6  ;;  %v2732_v6 = vld [vmem:[%s3412_s9 + $0xc] ss:$16 sps:$4 sm:$0xff]  }
 0x8ba   : > { %v1588_v63 = vsel %vm1586_vm4, %v1585_v4, %v2639_v48  ;;  %v2730_v48 = vld [vmem:[%s3412_s9 + $0x8] ss:$16 sps:$4 sm:$0xff]  }
 0x8bc   : > { %2611 = vmatpush3.bf16.msra.mxu1 %v2684_v43  ;;  %v2718_v43 = vld [vmem:[%s3412_s9 + $0x48] ss:$16 sps:$4 sm:$0xff]  }
 0x95f   : > { %v2595_v44 = vpop.f32.mrf.mxu1 }
 0x961   : > { %v1551_v45 = vpop.f32.mrf.mxu1 }
 0x962   : > { %v2640_v46 = vpack.i.bf16 %v2595_v44, %v1551_v45  ;;  %v2723_v44 = vld [vmem:[%s3412_s9 + $0x24] ss:$16 sps:$4 sm:$0xff]   ;;  %v2726_v45 = vld [vmem:[%s3412_s9 + $0x2c] ss:$16 sps:$4 sm:$0xff]  }
 0x964   : > { %2641 = vrot.lane.b32.xlu0 %v2640_v46, %s2816_s29  ;;  %v2721_v46 = vld [vmem:[%s3412_s9 + $0x20] ss:$16 sps:$4 sm:$0xff]  }
 0x9d6   : > { %v2642_v50 = vpop.permute.xlu0 %2641 }
 0x9d7   : > { %v2644_v52 = vunpack.i.h.bf16 %v2642_v50  ;;  %v2643_v53 = vunpack.i.l.bf16 %v2642_v50 }
 0x9d9   : > { %v1591_v58 = vsel %vm1589_vm5, %v1588_v63, %v2644_v52  ;;  %v1590_v60 = vsel %vm1589_vm5, %v1587_v56, %v2643_v53 }
 0x9da   : > { %v1592_v61 = vpack.c.bf16 %v1591_v58, %v1590_v60  ;;  %v2389_v58 = vld [vmem:[%s3410_s7] ss:$0 sm:$0xff] }
 0x9dc   : > { %2613 = vmatmul.mubr.bf16.vlgmr.msra.gmra.mxu1 %v1592_v61 }
 0x9dd   : > { %2039 = vmatprep.mubr.bf16.mxu1 %v2814_v27  ;;  %v2685_v27 = vld [vmem:[%s3412_s9 + $0xe0] ss:$16 sps:$4 sm:$0xff]  }
 0xa9c   : > { %v1691_v62 = vpop.f32.mrf.mxu1 }
 0xa9d   : > { %v1698_v25 = vadd.f32 %v1691_v62, %v2905_v0  ;;  %v2687_v0 = vld [vmem:[%s3412_s9 + $0xe4] ss:$16 sps:$4 sm:$0xff]  }
 0xa9e   : > { %v2614_v3 = vpop.f32.mrf.mxu1  ;;  %1964 = vmatprep.subr.bf16.mxu0 %v2687_v0  ;;  %v2735_v0 = vld [vmem:[%s3414_s11 + $0x70] sm:$0xff]  }
 0xa9f   : > { %v3211_v5 = vadd.f32 %v2388_v2, %v1698_v25  ;;  %1965 = vmatpush1.bf16.msra.mxu0 %v2685_v27  ;;  %v2734_v27 = vld [vmem:[%s3414_s11 + $0x38] sm:$0xff]  }
 0xaa0   : > { %v1694_v26 = vpop.f32.mrf.mxu1  ;;  %1966 = vmatprep.subr.bf16.mxu0 %v2693_v23  ;;  %v2746_v23 = vld [vmem:[%s3414_s11 + $0x8] sm:$0xff]  }
 0xaa1   : > { %v1699_v7 = vadd.f32 %v1694_v26, %v2907_v1  ;;  %1711 = vadd.xlane.f32.xlu1 %v3211_v5  ;;  %v2690_v1 = vld [vmem:[%s3412_s9 + $0xec] ss:$16 sps:$4 sm:$0xff]  }
 0xaa2   : > { %v2615_v8 = vpop.f32.mrf.mxu1  ;;  %2007 = vmatprep.subr.bf16.mxu1 %v2690_v1  ;;  %v2737_v1 = vld [vmem:[%s3414_s11 + $0x68] sm:$0xff]  }
 0xaa3   : > { %v3215_v10 = vadd.f32 %v2388_v2, %v1699_v7  ;;  %2008 = vmatpush1.bf16.msra.mxu1 %v2688_v11  ;;  %1967 = vmatpush1.bf16.msra.mxu0 %v2691_v12  ;;  %v2390_v2 = vld [vmem:[%s3411_s8] ss:$0 sm:$0xff]  ;;  %v2733_v8 = vld [vmem:[%s3414_s11 + $0x78] sm:$0xff]   ;;  %v2736_v11 = vld [vmem:[%s3414_s11 + $0x30] sm:$0xff]  }
 0xaa4   : > { %2009 = vmatprep.subr.bf16.mxu1 %v2696_v24  ;;  %1968 = vmatprep.subr.bf16.mxu0 %v2699_v28  ;;  %v2747_v24 = vld [vmem:[%s3414_s11 + $0x40] sm:$0xff]  }
 0xaa5   : > { %1713 = vadd.xlane.f32.xlu0 %v3215_v10  ;;  %v2748_v12 = vld [vmem:[%s3414_s11] sm:$0xff]  }
 0xaa7   : > { %2010 = vmatpush1.bf16.msra.mxu1 %v2694_v31  ;;  %1969 = vmatpush1.bf16.msra.mxu0 %v2697_v30  ;;  %v1782_v31 = vld [vmem:[%s3413_s10] sm:$0xf] }
 0xaa8   : > { %2011 = vmatprep.subr.bf16.mxu1 %v2702_v29  ;;  %1970 = vmatprep.subr.bf16.mxu0 %v2705_v34  ;;  %v1787_v28 = vrot.slane %v1782_v31, %v522_v55  ;;  %v1791_v29 = vrot.slane %v1782_v31, %v526_v57 }
 0xaab   : > { %2012 = vmatpush1.bf16.msra.mxu1 %v2700_v32  ;;  %1971 = vmatpush1.bf16.msra.mxu0 %v2703_v33 }
 0xaac   : > { %2013 = vmatprep.subr.bf16.mxu1 %v2708_v36  ;;  %1972 = vmatprep.subr.bf16.mxu0 %v2711_v9 }
 0xaaf   : > { %2014 = vmatpush1.bf16.msra.mxu1 %v2706_v35  ;;  %1973 = vmatpush1.bf16.msra.mxu0 %v2709_v38 }
 0xab0   : > { %2015 = vmatprep.subr.bf16.mxu1 %v2714_v37  ;;  %1974 = vmatprep.subr.bf16.mxu0 %v2717_v40 }
 0xab3   : > { %2016 = vmatpush1.bf16.msra.mxu1 %v2712_v39  ;;  %1975 = vmatpush1.bf16.msra.mxu0 %v2715_v42 }
 0xab4   : > { %2017 = vmatprep.subr.bf16.mxu1 %v2720_v41  ;;  %1976 = vmatprep.subr.bf16.mxu0 %v2723_v44 }
 0xab7   : > { %2018 = vmatpush1.bf16.msra.mxu1 %v2718_v43  ;;  %1977 = vmatpush1.bf16.msra.mxu0 %v2721_v46 }
 0xab8   : > { %2019 = vmatprep.subr.bf16.mxu1 %v2726_v45  ;;  %1978 = vmatprep.subr.bf16.mxu0 %v2729_v13 }
 0xabb   : > { %2020 = vmatpush1.bf16.msra.mxu1 %v2724_v47  ;;  %1979 = vmatpush1.bf16.msra.mxu0 %v2727_v14  ;;  %v1798_v14 = vsub.s32 3, %v3012_v54 }
 0xabc   : > { %2021 = vmatprep.subr.bf16.mxu1 %v2732_v6  ;;  %2498 = vmatprep.subr.bf16.mxu0 %v2733_v8 }
 0xabf   : > { %2022 = vmatpush1.bf16.msra.mxu1 %v2730_v48 }
 0xb2a   : > { %v1712_v15 = vpop.xlane.xlu1 %1711 }
 0xb2b   : > { %v1715_v16 = vmul.f32 0.0078125, %v1712_v15  ;;  %v2738_v15 = vld [vmem:[%s3414_s11 + $0x28] sm:$0xff]  }
 0xb2d   : > { %v3231_v17 = vsub.f32 %v3211_v5, %v1715_v16  ;;  %v2739_v16 = vld [vmem:[%s3414_s11 + $0x60] sm:$0xff]  }
 0xb2e   : > { %v1714_v18 = vpop.xlane.xlu0 %1713 }
 0xb2f   : > { %v1716_v20 = vmul.f32 0.0078125, %v1714_v18  ;;  %v1719_v21 = vmul.f32 %v3231_v17, %v3231_v17  ;;  %v2741_v18 = vld [vmem:[%s3414_s11 + $0x58] sm:$0xff]  }
 0xb31   : > { %v3236_v19 = vsub.f32 %v3215_v10, %v1716_v20  ;;  %1721 = vadd.xlane.f32.xlu0 %v1719_v21  ;;  %v2742_v20 = vld [vmem:[%s3414_s11 + $0x18] sm:$0xff]   ;;  %v2743_v21 = vld [vmem:[%s3414_s11 + $0x50] sm:$0xff]  }
 0xb33   : > { %v1720_v22 = vmul.f32 %v3236_v19, %v3236_v19 }
 0xb35   : > { %1723 = vadd.xlane.f32.xlu0 %v1720_v22  ;;  %v2745_v22 = vld [vmem:[%s3414_s11 + $0x48] sm:$0xff]  }
 0xbba   : > { %v1722_v49 = vpop.xlane.xlu0 %1721 }
 0xbbb   : > { %v1725_v50 = vmul.f32 0.0078125, %v1722_v49 }
 0xbbd   : > { %v1727_v4 = vadd.f32 1e-06, %v1725_v50 }
 0xbbe   : > { %v1724_v51 = vpop.xlane.xlu0 %1723 }
 0xbbf   : > { %2785 = vrsqrt.f32 %v1727_v4  ;;  %v1726_v52 = vmul.f32 0.0078125, %v1724_v51  ;;  %v1799_v4 = vrot.slane %v1782_v31, %v1798_v14 }
 0xbc1   : > { %v1728_v53 = vadd.f32 1e-06, %v1726_v52  ;;  %v1795_v52 = vrot.slane %v1782_v31, %v530_v59 }
 0xbc3   : > { %2787 = vrsqrt.f32 %v1728_v53 }
 0xbcc   : > { %v2786_v56 = vpop.eup %2785 }
 0xbcd   : > { %v1731_v63 = vmul.f32 %v2786_v56, %v3231_v17  ;;  %v2740_v17 = vld [vmem:[%s3414_s11 + $0x20] sm:$0xff]  }
 0xbcf   : > { %v1739_v62 = vmul.f32 %v2389_v58, %v1731_v63 }
 0xbd0   : > { %v2788_v60 = vpop.eup %2787 }
 0xbd1   : > { %v1732_v61 = vmul.f32 %v2788_v60, %v3236_v19  ;;  %v1747_v3 = vadd.f32 %v2390_v2, %v1739_v62  ;;  %v2744_v19 = vld [vmem:[%s3414_s11 + $0x10] sm:$0xff]  }
 0xbd3   : > { %v1740_v25 = vmul.f32 %v2389_v58, %v1732_v61 }
 0xbd5   : > { %v1748_v26 = vadd.f32 %v2390_v2, %v1740_v25 }
 0xbd7   : > { %v1749_v7 = vpack.c.bf16 %v1748_v26, %v1747_v3 }
 0xbd9   : > { %1997 = vmatmul.mubr.bf16.vlgmr.msra.gmra.mxu0 %v1749_v7  ;;  %2040 = vmatmul.mubr.bf16.vlgmr.msra.gmra.mxu1 %v1749_v7 }
 0xbda   : > { %2499 = vmatpush3.bf16.msra.mxu0 %v2734_v27 }
 0xbdb   : > { %2500 = vmatprep.subr.bf16.mxu0 %v2735_v0 }
 0xbde   : > { %2501 = vmatpush3.bf16.msra.mxu0 %v2736_v11 }
 0xbdf   : > { %2502 = vmatprep.subr.bf16.mxu0 %v2737_v1 }
 0xbe2   : > { %2503 = vmatpush3.bf16.msra.mxu0 %v2738_v15  ;;  %v2443_v15 = vld [vmem:[%s3415_s12] ss:$0 sm:$0xff] }
 0xbe3   : > { %2504 = vmatprep.subr.bf16.mxu0 %v2739_v16 }
 0xbe6   : > { %2505 = vmatpush3.bf16.msra.mxu0 %v2740_v17 }
 0xbe7   : > { %2506 = vmatprep.subr.bf16.mxu0 %v2741_v18 }
 0xbea   : > { %2507 = vmatpush3.bf16.msra.mxu0 %v2742_v20 }
 0xbeb   : > { %2508 = vmatprep.subr.bf16.mxu0 %v2743_v21 }
 0xbee   : > { %2509 = vmatpush3.bf16.msra.mxu0 %v2744_v19 }
 0xbef   : > { %2510 = vmatprep.subr.bf16.mxu0 %v2745_v22 }
 0xbf2   : > { %2511 = vmatpush3.bf16.msra.mxu0 %v2746_v23 }
 0xbf3   : > { %2512 = vmatprep.subr.bf16.mxu0 %v2747_v24 }
 0xbf6   : > { %2513 = vmatpush3.bf16.msra.mxu0 %v2748_v12 }
 0xc99   : > { %v1998_v30 = vpop.f32.mrf.mxu0  ;;  %v2041_v13 = vpop.f32.mrf.mxu1 }
 0xc9a   : > { %v1999_v32 = vadd.f32 %v1998_v30, %v1787_v28  ;;  %v2042_v3 = vadd.f32 %v2041_v13, %v1795_v52 }
 0xc9b   : > { %v2000_v33 = vpop.f32.mrf.mxu0  ;;  %v2043_v6 = vpop.f32.mrf.mxu1 }
 0xc9c   : > { %v2423_v34 = vmul.f32 -1.442695, %v1999_v32  ;;  %v2001_v35 = vadd.f32 %v2000_v33, %v1791_v29  ;;  %v2044_v62 = vadd.f32 %v2043_v6, %v1799_v4 }
 0xc9d   : > { %v2002_v36 = vpop.f32.mrf.mxu0  ;;  %v2045_v48 = vpop.f32.mrf.mxu1 }
 0xc9e   : > { %2789 = vpow2.f32 %v2423_v34  ;;  %v2424_v9 = vmul.f32 -1.442695, %v2001_v35  ;;  %v2003_v37 = vadd.f32 %v2002_v36, %v1787_v28  ;;  %v2046_v61 = vadd.f32 %v2045_v48, %v1795_v52 }
 0xc9f   : > { %v2004_v38 = vpop.f32.mrf.mxu0  ;;  %v2047_v53 = vpop.f32.mrf.mxu1 }
 0xca0   : > { %2791 = vpow2.f32 %v2424_v9  ;;  %v2425_v39 = vmul.f32 -1.442695, %v2003_v37  ;;  %v2005_v40 = vadd.f32 %v2004_v38, %v1791_v29  ;;  %v2048_v25 = vadd.f32 %v2047_v53, %v1799_v4 }
 0xca2   : > { %2793 = vpow2.f32 %v2425_v39  ;;  %v2426_v41 = vmul.f32 -1.442695, %v2005_v40 }
 0xca4   : > { %2795 = vpow2.f32 %v2426_v41 }
 0xcab   : > { %v2790_v55 = vpop.eup %2789 }
 0xcac   : > { %v2062_v43 = vadd.f32 1.0, %v2790_v55 }
 0xcad   : > { %v2792_v42 = vpop.eup %2791 }
 0xcae   : > { %v2063_v57 = vadd.f32 1.0, %v2792_v42 }
 0xcaf   : > { %v2794_v44 = vpop.eup %2793 }
 0xcb0   : > { %2797 = vrcp.f32 %v2063_v57  ;;  %v2064_v45 = vadd.f32 1.0, %v2794_v44 }
 0xcb1   : > { %v2796_v46 = vpop.eup %2795  ;;  %2799 = vrcp.f32 %v2062_v43 }
 0xcb2   : > { %2801 = vrcp.f32 %v2064_v45  ;;  %v2065_v47 = vadd.f32 1.0, %v2796_v46 }
 0xcb4   : > { %2803 = vrcp.f32 %v2065_v47 }
 0xcbd   : > { %v2798_v49 = vpop.eup %2797 }
 0xcbe   : > { %v2800_v50 = vpop.eup %2799  ;;  %v2075_v56 = vmul.f32 %v2798_v49, %v2001_v35 }
 0xcbf   : > { %v2802_v51 = vpop.eup %2801  ;;  %v2074_v60 = vmul.f32 %v2800_v50, %v1999_v32 }
 0xcc0   : > { %v2076_v63 = vmul.f32 %v2802_v51, %v2003_v37  ;;  %v2079_v7 = vmul.f32 %v2075_v56, %v2044_v62 }
 0xcc1   : > { %v2804_v58 = vpop.eup %2803  ;;  %v2078_v27 = vmul.f32 %v2074_v60, %v2042_v3 }
 0xcc2   : > { %v2077_v2 = vmul.f32 %v2804_v58, %v2005_v40  ;;  %v2080_v26 = vmul.f32 %v2076_v63, %v2046_v61 }
 0xcc4   : > { %v2081_v8 = vmul.f32 %v2077_v2, %v2048_v25  ;;  %v2082_v11 = vpack.c.bf16 %v2080_v26, %v2078_v27 }
 0xcc6   : > { %v2083_v0 = vpack.c.bf16 %v2081_v8, %v2079_v7 }
 0xcc8   : > { %2244 = vmatprep.mubr.bf16.mxu0 %v2083_v0 }
 0xcc9   : > { %2245 = vmatmul.mubr.bf16.vlgmr.msra.gmra.mxu0 %v2082_v11 }
 0xd89   : > { %v2514_v54 = vpop.f32.mrf.mxu0 }
 0xd8b   : > { %v2515_v59 = vpop.f32.mrf.mxu0 }
 0xd8c   : > { %v2516_v1 = vadd.f32 %v2515_v59, %v2514_v54 }
 0xd8d   : > { %v2517_v16 = vpop.f32.mrf.mxu0 }
 0xd8e   : > { %v2253_v17 = vadd.f32 %v2516_v1, %v3211_v5 }
 0xd8f   : > { %v2518_v18 = vpop.f32.mrf.mxu0 }
 0xd90   : > { %v2262_v20 = vadd.f32 %v2443_v15, %v2253_v17  ;;  %v2519_v21 = vadd.f32 %v2518_v18, %v2517_v16 }
 0xd92   : > { %2264 = vst [vmem:[%s440_s14] sm:$0xff] %v2262_v20  ;;  %v2254_v19 = vadd.f32 %v2519_v21, %v3215_v10 }
 0xd94   : > { %v2263_v22 = vadd.f32 %v2443_v15, %v2254_v19 }
 0xd96   : > { %2265 = vst [vmem:[%s440_s14 + $0x8] sm:$0xff] %v2263_v22 }
 0xd97 PF: > { %s23_s25 = sadd.s32 1, %s2811_s25  }
 0xd98   : > { %p20_p4 = scmp.ge.s32.totalorder %s23_s25, 4  }
 0xd9a   :  { %22 = sbr.rel (!%p20_p4) target bundleno = 1 (0x1), region = 102 }

</bundles_post_ra>
